<compile_context>
chip_gen: v7x
topology: tpu7x:2x2x1
jax: 0.10.0
libtpu: 0.0.40
codegen_flags: <defaults>
</compile_context>

<pallas_src>
import functools

import jax
import jax.numpy as jnp
from jax.experimental import pallas as pl
from jax.experimental.pallas import tpu as pltpu

K = 5          # conv kernel size
PAD = 2        # conv padding ("same")
EPS = 1e-5     # BatchNorm eps (PyTorch default)


def _round_up(x, m):
    return (x + m - 1) // m * m


# ------------------------- weight packing (wrapper side) --------------------------
def _build_wband_weight(w_oidhw, W):
    """Pack (Co, Ci, 5, 5, 5) conv weights into per-(kd, kh) W-banded matrices.

    Returns wb of shape (K*K, Wp*Ci, W*Co), bf16, with
      wb[kd*K + kh, (w+kw)*Ci + ci, w*Co + co] = w[co, ci, kd, kh, kw]
    so the (kw, ci) reduction and the W spatial structure become one dense MXU matmul per
    (kd, kh) tap, while the kd/kh shifts are pure row offsets of the flattened input slab.
    """
    Co, Ci, Kd, Kh, Kw = w_oidhw.shape
    Wp = W + 2 * PAD
    wt = jnp.transpose(w_oidhw, (2, 3, 4, 1, 0)).astype(jnp.float32)   # (kd,kh,kw,ci,co)
    sel = (jnp.arange(Wp)[None, :, None] - jnp.arange(W)[None, None, :]
           == jnp.arange(Kw)[:, None, None]).astype(jnp.float32)        # (K, Wp, W)
    wb = jnp.einsum('kPw,dhkio->dhPiwo', sel, wt)                        # (Kd,Kh,Wp,Ci,W,Co)
    return wb.reshape(Kd * Kh, Wp * Ci, W * Co).astype(jnp.bfloat16)


# ------------------- kernel 1: conv3d + fused BN batch statistics -----------------
def _conv_stats_kernel(xs_ref, wb_ref, mask_ref, y_ref, stats_ref, *, Hp):
    # xs_ref   : (1, RIN, Wp*C)   bf16  padded per-batch-element slab, rows = dp*Hp + hp
    # wb_ref   : (K*K, Wp*C, W*C) bf16  W-banded weights, single VMEM-resident copy
    # mask_ref : (M, W*C)         f32   1.0 on valid rows (h < H), 0.0 on junk rows
    # y_ref    : (1, M, W*C)      bf16  conv output rows (junk rows cropped by the wrapper)
    # stats_ref: (1, 2, W*C)      f32   masked [sum; sum-of-squares] partial statistics
    M = y_ref.shape[1]
    WC = y_ref.shape[2]

    acc = jnp.zeros((M, WC), jnp.float32)
    for kd in range(K):                       # 25 MXU matmuls with M = D*Hp rows each
        for kh in range(K):
            off = kd * Hp + kh                # kd/kh taps == row shifts of the slab
            lhs = xs_ref[0, off:off + M, :]                       # (M, Wp*C) bf16
            acc = acc + jnp.dot(lhs, wb_ref[kd * K + kh],
                                preferred_element_type=jnp.float32)
    # NOTE: conv bias intentionally omitted — exactly cancelled by the batch-stat BN below.
    y_ref[...] = acc.astype(y_ref.dtype)[None]

    # Fused BN batch-statistics epilogue: masked sublane (row) reduction only; the tiny
    # (W -> C) lane fold is finished in the wrapper on (N, 2, W*C) numbers.
    a = acc * mask_ref[...]
    s = jnp.sum(a, axis=0, keepdims=True)                          # (1, W*C)
    ss = jnp.sum(acc * a, axis=0, keepdims=True)                   # (1, W*C)
    stats_ref[...] = jnp.concatenate([s, ss], axis=0)[None]        # (1, 2, W*C)


# ------------------------ kernel 2: BN apply (affine) + ELU ------------------------
def _bn_elu_kernel(y_ref, scale_ref, shift_ref, o_ref):
    # y_ref: (TR, H*W*C) lane-dense bf16 tile; scale/shift: (1, H*W*C) channel-tiled affine
    z = y_ref[...].astype(jnp.float32) * scale_ref[...] + shift_ref[...]
    o_ref[...] = jnp.where(z > 0, z, jnp.exp(jnp.minimum(z, 0.0)) - 1.0)   # ELU(alpha=1)


# ------------------------------------ wrapper --------------------------------------
def luconv_forward(x_ncdhw, w_oidhw, bias, gamma, beta):
    del bias  # absorbed by the batch-statistics (training-mode) BatchNorm

    x = jnp.transpose(x_ncdhw, (0, 2, 3, 4, 1)).astype(jnp.float32)   # NDHWC
    N, D, H, W, C = x.shape
    Hp, Wp = H + 2 * PAD, W + 2 * PAD
    WpC, WC, HWC = Wp * C, W * C, H * W * C
    M = D * Hp                                   # conv-output rows per batch element
    RIN = (D + 2 * PAD + 1) * Hp                 # one extra D plane so all tap slices fit

    xp = jnp.pad(x, ((0, 0), (PAD, PAD + 1), (PAD, PAD), (PAD, PAD), (0, 0)))
    xs = xp.reshape(N, RIN, WpC).astype(jnp.bfloat16)        # lane-dense bf16 operand slab
    wb = _build_wband_weight(w_oidhw, W)                      # (K*K, Wp*C, W*C) bf16

    row_valid = jnp.tile(jnp.arange(Hp) < H, D).astype(jnp.float32)          # (M,)
    mask = jnp.broadcast_to(row_valid[:, None], (M, WC))                     # (M, W*C)

    kern = functools.partial(_conv_stats_kernel, Hp=Hp)
    y_rows, stats = pl.pallas_call(
        kern,
        out_shape=(jax.ShapeDtypeStruct((N, M, WC), jnp.bfloat16),
                   jax.ShapeDtypeStruct((N, 2, WC), jnp.float32)),
        grid=(N,),
        in_specs=[
            pl.BlockSpec((1, RIN, WpC), lambda n: (n, 0, 0)),
            # whole weight / mask resident once in VMEM: no per-step DMA, no double-buffer
            pl.BlockSpec(memory_space=pltpu.MemorySpace.VMEM),
            pl.BlockSpec(memory_space=pltpu.MemorySpace.VMEM),
        ],
        out_specs=[
            pl.BlockSpec((1, M, WC), lambda n: (n, 0, 0)),
            pl.BlockSpec((1, 2, WC), lambda n: (n, 0, 0)),
        ],
        compiler_params=pltpu.CompilerParams(
            dimension_semantics=("parallel",),           # batch axis -> megacore split
            vmem_limit_bytes=24 * 1024 * 1024),          # actual footprint is far below this
    )(xs, wb, mask)

    # Tiny per-channel math on the Pallas-computed batch statistics (fold W groups -> C).
    cnt = float(N * D * H * W)
    s_c = jnp.sum(stats[:, 0, :].reshape(N, W, C), axis=(0, 1))
    ss_c = jnp.sum(stats[:, 1, :].reshape(N, W, C), axis=(0, 1))
    mean = s_c / cnt
    var = jnp.maximum(ss_c / cnt - mean * mean, 0.0)              # biased var (training BN)
    scale = gamma.astype(jnp.float32) * jax.lax.rsqrt(var + EPS)
    shift = beta.astype(jnp.float32) - mean * scale
    scale_row = jnp.tile(scale, H * W).reshape(1, HWC)            # channel-tiled, lane-dense
    shift_row = jnp.tile(shift, H * W).reshape(1, HWC)

    # Crop the junk rows (h >= H) and present a fully lane-dense (N*D, H*W*C) slab.
    y_valid = y_rows.reshape(N, D, Hp, WC)[:, :, :H, :].reshape(N * D, HWC)

    # Row-tile: big (bandwidth-friendly) but VMEM-bounded; pad rows instead of shrinking TR.
    ND = N * D
    if ND >= 128:
        TR = max(8, min(128, (4 * 1024 * 1024) // (HWC * 6) // 8 * 8))
    else:
        TR = _round_up(ND, 8)
    ND_pad = _round_up(ND, TR)
    if ND_pad != ND:
        y_valid = jnp.pad(y_valid, ((0, ND_pad - ND), (0, 0)))

    out2 = pl.pallas_call(
        _bn_elu_kernel,
        out_shape=jax.ShapeDtypeStruct((ND_pad, HWC), jnp.float32),
        grid=(ND_pad // TR,),
        in_specs=[
            pl.BlockSpec((TR, HWC), lambda i: (i, 0)),
            pl.BlockSpec((1, HWC), lambda i: (0, 0)),
            pl.BlockSpec((1, HWC), lambda i: (0, 0)),
        ],
        out_specs=pl.BlockSpec((TR, HWC), lambda i: (i, 0)),
        compiler_params=pltpu.CompilerParams(
            dimension_semantics=("parallel",),
            vmem_limit_bytes=32 * 1024 * 1024),
    )(y_valid, scale_row, shift_row)

    out = out2[:ND].reshape(N, D, H, W, C)
    return jnp.transpose(out, (0, 4, 1, 2, 3))                    # back to NCDHW


# -------------------------------- pure-JAX reference --------------------------------
def luconv_ref(x_ncdhw, w_oidhw, bias, gamma, beta):
    x = jnp.transpose(x_ncdhw, (0, 2, 3, 4, 1)).astype(jnp.float32)
    w = jnp.transpose(w_oidhw, (2, 3, 4, 1, 0)).astype(jnp.float32)
    conv = jax.lax.conv_general_dilated(
        x, w, window_strides=(1, 1, 1), padding=((PAD, PAD),) * 3,
        dimension_numbers=("NDHWC", "DHWIO", "NDHWC"))
    conv = conv + bias.reshape(1, 1, 1, 1, -1)
    mean = jnp.mean(conv, axis=(0, 1, 2, 3), keepdims=True)
    var = jnp.mean((conv - mean) ** 2, axis=(0, 1, 2, 3), keepdims=True)
    yhat = (conv - mean) * jax.lax.rsqrt(var + EPS)
    z = yhat * gamma.reshape(1, 1, 1, 1, -1) + beta.reshape(1, 1, 1, 1, -1)
    out = jnp.where(z > 0, z, jnp.exp(jnp.minimum(z, 0.0)) - 1.0)
    return jnp.transpose(out, (0, 4, 1, 2, 3))


if __name__ == "__main__":
    # small shapes: nchan = 8, spatial = 8, batch = 2  (input is 5-D NCDHW)
    N, C, D, H, W = 2, 8, 8, 8, 8
    key = jax.random.PRNGKey(0)
    kx, kw, kb, kg, kbt = jax.random.split(key, 5)

    x = jax.random.normal(kx, (N, C, D, H, W), jnp.float32)
    fan_in = C * K * K * K
    w_conv = jax.random.normal(kw, (C, C, K, K, K), jnp.float32) / jnp.sqrt(fan_in)
    b_conv = 0.01 * jax.random.normal(kb, (C,), jnp.float32)
    gamma = 1.0 + 0.1 * jax.random.normal(kg, (C,), jnp.float32)
    beta = 0.1 * jax.random.normal(kbt, (C,), jnp.float32)

    out = luconv_forward(x, w_conv, b_conv, gamma, beta)
    out = jax.block_until_ready(out)

    ref = luconv_ref(x, w_conv, b_conv, gamma, beta)
    assert out.shape == (N, C, D, H, W)
    # bf16 matmul operands + bf16 intermediate activation => ~1e-2-level agreement vs f32 ref
    assert jnp.allclose(out, ref, rtol=3e-2, atol=3e-2), "mismatch vs reference"

    print("KERNEL_OK")
</pallas_src>

<mosaic_0001>
module attributes {stable_mosaic.version = 11 : i64} {
  func.func @_conv_stats_kernel(%arg0: i32, %arg1: memref<1x156x96xbf16, #tpu.memory_space<vmem>>, %arg2: memref<25x96x64xbf16, #tpu.memory_space<vmem>>, %arg3: memref<96x64xf32, #tpu.memory_space<vmem>>, %arg4: memref<1x96x64xbf16, #tpu.memory_space<vmem>>, %arg5: memref<1x2x64xf32, #tpu.memory_space<vmem>>) attributes {dimension_semantics = [#tpu.dimension_semantics<parallel>], iteration_bounds = array<i64: 2>, scalar_prefetch = 0 : i64, scratch_operands = 0 : i64, tpu.core_type = #tpu.core_type<tc>, window_params = [{transform_indices = @transform_0, window_bounds = array<i64: 1, 156, 96>}, {pipeline_mode = #tpu.pipeline_mode<synchronous>, transform_indices = @transform_1, window_bounds = array<i64: 25, 96, 64>}, {pipeline_mode = #tpu.pipeline_mode<synchronous>, transform_indices = @transform_2, window_bounds = array<i64: 96, 64>}, {transform_indices = @transform_3, window_bounds = array<i64: 1, 96, 64>}, {transform_indices = @transform_4, window_bounds = array<i64: 1, 2, 64>}]} {
    %cst = arith.constant 0.000000e+00 : f32
    %0 = vector.broadcast %cst : f32 to vector<96x64xf32>
    %c0 = arith.constant 0 : index
    %c0_0 = arith.constant 0 : index
    %c0_1 = arith.constant 0 : index
    %1 = vector.load %arg1[%c0, %c0_0, %c0_1] : memref<1x156x96xbf16, #tpu.memory_space<vmem>>, vector<1x96x96xbf16>
    %2 = vector.shape_cast %1 : vector<1x96x96xbf16> to vector<96x96xbf16>
    %c0_2 = arith.constant 0 : index
    %c0_3 = arith.constant 0 : index
    %c0_4 = arith.constant 0 : index
    %3 = vector.load %arg2[%c0_2, %c0_3, %c0_4] : memref<25x96x64xbf16, #tpu.memory_space<vmem>>, vector<1x96x64xbf16>
    %4 = vector.shape_cast %3 : vector<1x96x64xbf16> to vector<96x64xbf16>
    %cst_5 = arith.constant dense<0.000000e+00> : vector<96x64xf32>
    %5 = tpu.matmul %2, %4, %cst_5 {dimension_numbers = #tpu.dot_dimension_numbers<[1], [0], [0], [1], [0, 0, 1, 1], [], []>} : vector<96x96xbf16>, vector<96x64xbf16>, vector<96x64xf32> -> vector<96x64xf32>
    %6 = arith.addf %0, %5 : vector<96x64xf32>
    %c0_6 = arith.constant 0 : index
    %c1 = arith.constant 1 : index
    %c0_7 = arith.constant 0 : index
    %7 = vector.load %arg1[%c0_6, %c1, %c0_7] : memref<1x156x96xbf16, #tpu.memory_space<vmem>>, vector<1x96x96xbf16>
    %8 = vector.shape_cast %7 : vector<1x96x96xbf16> to vector<96x96xbf16>
    %c1_8 = arith.constant 1 : index
    %c0_9 = arith.constant 0 : index
    %c0_10 = arith.constant 0 : index
    %9 = vector.load %arg2[%c1_8, %c0_9, %c0_10] : memref<25x96x64xbf16, #tpu.memory_space<vmem>>, vector<1x96x64xbf16>
    %10 = vector.shape_cast %9 : vector<1x96x64xbf16> to vector<96x64xbf16>
    %cst_11 = arith.constant dense<0.000000e+00> : vector<96x64xf32>
    %11 = tpu.matmul %8, %10, %cst_11 {dimension_numbers = #tpu.dot_dimension_numbers<[1], [0], [0], [1], [0, 0, 1, 1], [], []>} : vector<96x96xbf16>, vector<96x64xbf16>, vector<96x64xf32> -> vector<96x64xf32>
    %12 = arith.addf %6, %11 : vector<96x64xf32>
    %c0_12 = arith.constant 0 : index
    %c2 = arith.constant 2 : index
    %c0_13 = arith.constant 0 : index
    %13 = vector.load %arg1[%c0_12, %c2, %c0_13] : memref<1x156x96xbf16, #tpu.memory_space<vmem>>, vector<1x96x96xbf16>
    %14 = vector.shape_cast %13 : vector<1x96x96xbf16> to vector<96x96xbf16>
    %c2_14 = arith.constant 2 : index
    %c0_15 = arith.constant 0 : index
    %c0_16 = arith.constant 0 : index
    %15 = vector.load %arg2[%c2_14, %c0_15, %c0_16] : memref<25x96x64xbf16, #tpu.memory_space<vmem>>, vector<1x96x64xbf16>
    %16 = vector.shape_cast %15 : vector<1x96x64xbf16> to vector<96x64xbf16>
    %cst_17 = arith.constant dense<0.000000e+00> : vector<96x64xf32>
    %17 = tpu.matmul %14, %16, %cst_17 {dimension_numbers = #tpu.dot_dimension_numbers<[1], [0], [0], [1], [0, 0, 1, 1], [], []>} : vector<96x96xbf16>, vector<96x64xbf16>, vector<96x64xf32> -> vector<96x64xf32>
    %18 = arith.addf %12, %17 : vector<96x64xf32>
    %c0_18 = arith.constant 0 : index
    %c3 = arith.constant 3 : index
    %c0_19 = arith.constant 0 : index
    %19 = vector.load %arg1[%c0_18, %c3, %c0_19] : memref<1x156x96xbf16, #tpu.memory_space<vmem>>, vector<1x96x96xbf16>
    %20 = vector.shape_cast %19 : vector<1x96x96xbf16> to vector<96x96xbf16>
    %c3_20 = arith.constant 3 : index
    %c0_21 = arith.constant 0 : index
    %c0_22 = arith.constant 0 : index
    %21 = vector.load %arg2[%c3_20, %c0_21, %c0_22] : memref<25x96x64xbf16, #tpu.memory_space<vmem>>, vector<1x96x64xbf16>
    %22 = vector.shape_cast %21 : vector<1x96x64xbf16> to vector<96x64xbf16>
    %cst_23 = arith.constant dense<0.000000e+00> : vector<96x64xf32>
    %23 = tpu.matmul %20, %22, %cst_23 {dimension_numbers = #tpu.dot_dimension_numbers<[1], [0], [0], [1], [0, 0, 1, 1], [], []>} : vector<96x96xbf16>, vector<96x64xbf16>, vector<96x64xf32> -> vector<96x64xf32>
    %24 = arith.addf %18, %23 : vector<96x64xf32>
    %c0_24 = arith.constant 0 : index
    %c4 = arith.constant 4 : index
    %c0_25 = arith.constant 0 : index
    %25 = vector.load %arg1[%c0_24, %c4, %c0_25] : memref<1x156x96xbf16, #tpu.memory_space<vmem>>, vector<1x96x96xbf16>
    %26 = vector.shape_cast %25 : vector<1x96x96xbf16> to vector<96x96xbf16>
    %c4_26 = arith.constant 4 : index
    %c0_27 = arith.constant 0 : index
    %c0_28 = arith.constant 0 : index
    %27 = vector.load %arg2[%c4_26, %c0_27, %c0_28] : memref<25x96x64xbf16, #tpu.memory_space<vmem>>, vector<1x96x64xbf16>
    %28 = vector.shape_cast %27 : vector<1x96x64xbf16> to vector<96x64xbf16>
    %cst_29 = arith.constant dense<0.000000e+00> : vector<96x64xf32>
    %29 = tpu.matmul %26, %28, %cst_29 {dimension_numbers = #tpu.dot_dimension_numbers<[1], [0], [0], [1], [0, 0, 1, 1], [], []>} : vector<96x96xbf16>, vector<96x64xbf16>, vector<96x64xf32> -> vector<96x64xf32>
    %30 = arith.addf %24, %29 : vector<96x64xf32>
    %c0_30 = arith.constant 0 : index
    %c12 = arith.constant 12 : index
    %c0_31 = arith.constant 0 : index
    %31 = vector.load %arg1[%c0_30, %c12, %c0_31] : memref<1x156x96xbf16, #tpu.memory_space<vmem>>, vector<1x96x96xbf16>
    %32 = vector.shape_cast %31 : vector<1x96x96xbf16> to vector<96x96xbf16>
    %c5 = arith.constant 5 : index
    %c0_32 = arith.constant 0 : index
    %c0_33 = arith.constant 0 : index
    %33 = vector.load %arg2[%c5, %c0_32, %c0_33] : memref<25x96x64xbf16, #tpu.memory_space<vmem>>, vector<1x96x64xbf16>
    %34 = vector.shape_cast %33 : vector<1x96x64xbf16> to vector<96x64xbf16>
    %cst_34 = arith.constant dense<0.000000e+00> : vector<96x64xf32>
    %35 = tpu.matmul %32, %34, %cst_34 {dimension_numbers = #tpu.dot_dimension_numbers<[1], [0], [0], [1], [0, 0, 1, 1], [], []>} : vector<96x96xbf16>, vector<96x64xbf16>, vector<96x64xf32> -> vector<96x64xf32>
    %36 = arith.addf %30, %35 : vector<96x64xf32>
    %c0_35 = arith.constant 0 : index
    %c13 = arith.constant 13 : index
    %c0_36 = arith.constant 0 : index
    %37 = vector.load %arg1[%c0_35, %c13, %c0_36] : memref<1x156x96xbf16, #tpu.memory_space<vmem>>, vector<1x96x96xbf16>
    %38 = vector.shape_cast %37 : vector<1x96x96xbf16> to vector<96x96xbf16>
    %c6 = arith.constant 6 : index
    %c0_37 = arith.constant 0 : index
    %c0_38 = arith.constant 0 : index
    %39 = vector.load %arg2[%c6, %c0_37, %c0_38] : memref<25x96x64xbf16, #tpu.memory_space<vmem>>, vector<1x96x64xbf16>
    %40 = vector.shape_cast %39 : vector<1x96x64xbf16> to vector<96x64xbf16>
    %cst_39 = arith.constant dense<0.000000e+00> : vector<96x64xf32>
    %41 = tpu.matmul %38, %40, %cst_39 {dimension_numbers = #tpu.dot_dimension_numbers<[1], [0], [0], [1], [0, 0, 1, 1], [], []>} : vector<96x96xbf16>, vector<96x64xbf16>, vector<96x64xf32> -> vector<96x64xf32>
    %42 = arith.addf %36, %41 : vector<96x64xf32>
    %c0_40 = arith.constant 0 : index
    %c14 = arith.constant 14 : index
    %c0_41 = arith.constant 0 : index
    %43 = vector.load %arg1[%c0_40, %c14, %c0_41] : memref<1x156x96xbf16, #tpu.memory_space<vmem>>, vector<1x96x96xbf16>
    %44 = vector.shape_cast %43 : vector<1x96x96xbf16> to vector<96x96xbf16>
    %c7 = arith.constant 7 : index
    %c0_42 = arith.constant 0 : index
    %c0_43 = arith.constant 0 : index
    %45 = vector.load %arg2[%c7, %c0_42, %c0_43] : memref<25x96x64xbf16, #tpu.memory_space<vmem>>, vector<1x96x64xbf16>
    %46 = vector.shape_cast %45 : vector<1x96x64xbf16> to vector<96x64xbf16>
    %cst_44 = arith.constant dense<0.000000e+00> : vector<96x64xf32>
    %47 = tpu.matmul %44, %46, %cst_44 {dimension_numbers = #tpu.dot_dimension_numbers<[1], [0], [0], [1], [0, 0, 1, 1], [], []>} : vector<96x96xbf16>, vector<96x64xbf16>, vector<96x64xf32> -> vector<96x64xf32>
    %48 = arith.addf %42, %47 : vector<96x64xf32>
    %c0_45 = arith.constant 0 : index
    %c15 = arith.constant 15 : index
    %c0_46 = arith.constant 0 : index
    %49 = vector.load %arg1[%c0_45, %c15, %c0_46] : memref<1x156x96xbf16, #tpu.memory_space<vmem>>, vector<1x96x96xbf16>
    %50 = vector.shape_cast %49 : vector<1x96x96xbf16> to vector<96x96xbf16>
    %c8 = arith.constant 8 : index
    %c0_47 = arith.constant 0 : index
    %c0_48 = arith.constant 0 : index
    %51 = vector.load %arg2[%c8, %c0_47, %c0_48] : memref<25x96x64xbf16, #tpu.memory_space<vmem>>, vector<1x96x64xbf16>
    %52 = vector.shape_cast %51 : vector<1x96x64xbf16> to vector<96x64xbf16>
    %cst_49 = arith.constant dense<0.000000e+00> : vector<96x64xf32>
    %53 = tpu.matmul %50, %52, %cst_49 {dimension_numbers = #tpu.dot_dimension_numbers<[1], [0], [0], [1], [0, 0, 1, 1], [], []>} : vector<96x96xbf16>, vector<96x64xbf16>, vector<96x64xf32> -> vector<96x64xf32>
    %54 = arith.addf %48, %53 : vector<96x64xf32>
    %c0_50 = arith.constant 0 : index
    %c16 = arith.constant 16 : index
    %c0_51 = arith.constant 0 : index
    %55 = vector.load %arg1[%c0_50, %c16, %c0_51] : memref<1x156x96xbf16, #tpu.memory_space<vmem>>, vector<1x96x96xbf16>
    %56 = vector.shape_cast %55 : vector<1x96x96xbf16> to vector<96x96xbf16>
    %c9 = arith.constant 9 : index
    %c0_52 = arith.constant 0 : index
    %c0_53 = arith.constant 0 : index
    %57 = vector.load %arg2[%c9, %c0_52, %c0_53] : memref<25x96x64xbf16, #tpu.memory_space<vmem>>, vector<1x96x64xbf16>
    %58 = vector.shape_cast %57 : vector<1x96x64xbf16> to vector<96x64xbf16>
    %cst_54 = arith.constant dense<0.000000e+00> : vector<96x64xf32>
    %59 = tpu.matmul %56, %58, %cst_54 {dimension_numbers = #tpu.dot_dimension_numbers<[1], [0], [0], [1], [0, 0, 1, 1], [], []>} : vector<96x96xbf16>, vector<96x64xbf16>, vector<96x64xf32> -> vector<96x64xf32>
    %60 = arith.addf %54, %59 : vector<96x64xf32>
    %c0_55 = arith.constant 0 : index
    %c24 = arith.constant 24 : index
    %c0_56 = arith.constant 0 : index
    %61 = vector.load %arg1[%c0_55, %c24, %c0_56] : memref<1x156x96xbf16, #tpu.memory_space<vmem>>, vector<1x96x96xbf16>
    %62 = vector.shape_cast %61 : vector<1x96x96xbf16> to vector<96x96xbf16>
    %c10 = arith.constant 10 : index
    %c0_57 = arith.constant 0 : index
    %c0_58 = arith.constant 0 : index
    %63 = vector.load %arg2[%c10, %c0_57, %c0_58] : memref<25x96x64xbf16, #tpu.memory_space<vmem>>, vector<1x96x64xbf16>
    %64 = vector.shape_cast %63 : vector<1x96x64xbf16> to vector<96x64xbf16>
    %cst_59 = arith.constant dense<0.000000e+00> : vector<96x64xf32>
    %65 = tpu.matmul %62, %64, %cst_59 {dimension_numbers = #tpu.dot_dimension_numbers<[1], [0], [0], [1], [0, 0, 1, 1], [], []>} : vector<96x96xbf16>, vector<96x64xbf16>, vector<96x64xf32> -> vector<96x64xf32>
    %66 = arith.addf %60, %65 : vector<96x64xf32>
    %c0_60 = arith.constant 0 : index
    %c25 = arith.constant 25 : index
    %c0_61 = arith.constant 0 : index
    %67 = vector.load %arg1[%c0_60, %c25, %c0_61] : memref<1x156x96xbf16, #tpu.memory_space<vmem>>, vector<1x96x96xbf16>
    %68 = vector.shape_cast %67 : vector<1x96x96xbf16> to vector<96x96xbf16>
    %c11 = arith.constant 11 : index
    %c0_62 = arith.constant 0 : index
    %c0_63 = arith.constant 0 : index
    %69 = vector.load %arg2[%c11, %c0_62, %c0_63] : memref<25x96x64xbf16, #tpu.memory_space<vmem>>, vector<1x96x64xbf16>
    %70 = vector.shape_cast %69 : vector<1x96x64xbf16> to vector<96x64xbf16>
    %cst_64 = arith.constant dense<0.000000e+00> : vector<96x64xf32>
    %71 = tpu.matmul %68, %70, %cst_64 {dimension_numbers = #tpu.dot_dimension_numbers<[1], [0], [0], [1], [0, 0, 1, 1], [], []>} : vector<96x96xbf16>, vector<96x64xbf16>, vector<96x64xf32> -> vector<96x64xf32>
    %72 = arith.addf %66, %71 : vector<96x64xf32>
    %c0_65 = arith.constant 0 : index
    %c26 = arith.constant 26 : index
    %c0_66 = arith.constant 0 : index
    %73 = vector.load %arg1[%c0_65, %c26, %c0_66] : memref<1x156x96xbf16, #tpu.memory_space<vmem>>, vector<1x96x96xbf16>
    %74 = vector.shape_cast %73 : vector<1x96x96xbf16> to vector<96x96xbf16>
    %c12_67 = arith.constant 12 : index
    %c0_68 = arith.constant 0 : index
    %c0_69 = arith.constant 0 : index
    %75 = vector.load %arg2[%c12_67, %c0_68, %c0_69] : memref<25x96x64xbf16, #tpu.memory_space<vmem>>, vector<1x96x64xbf16>
    %76 = vector.shape_cast %75 : vector<1x96x64xbf16> to vector<96x64xbf16>
    %cst_70 = arith.constant dense<0.000000e+00> : vector<96x64xf32>
    %77 = tpu.matmul %74, %76, %cst_70 {dimension_numbers = #tpu.dot_dimension_numbers<[1], [0], [0], [1], [0, 0, 1, 1], [], []>} : vector<96x96xbf16>, vector<96x64xbf16>, vector<96x64xf32> -> vector<96x64xf32>
    %78 = arith.addf %72, %77 : vector<96x64xf32>
    %c0_71 = arith.constant 0 : index
    %c27 = arith.constant 27 : index
    %c0_72 = arith.constant 0 : index
    %79 = vector.load %arg1[%c0_71, %c27, %c0_72] : memref<1x156x96xbf16, #tpu.memory_space<vmem>>, vector<1x96x96xbf16>
    %80 = vector.shape_cast %79 : vector<1x96x96xbf16> to vector<96x96xbf16>
    %c13_73 = arith.constant 13 : index
    %c0_74 = arith.constant 0 : index
    %c0_75 = arith.constant 0 : index
    %81 = vector.load %arg2[%c13_73, %c0_74, %c0_75] : memref<25x96x64xbf16, #tpu.memory_space<vmem>>, vector<1x96x64xbf16>
    %82 = vector.shape_cast %81 : vector<1x96x64xbf16> to vector<96x64xbf16>
    %cst_76 = arith.constant dense<0.000000e+00> : vector<96x64xf32>
    %83 = tpu.matmul %80, %82, %cst_76 {dimension_numbers = #tpu.dot_dimension_numbers<[1], [0], [0], [1], [0, 0, 1, 1], [], []>} : vector<96x96xbf16>, vector<96x64xbf16>, vector<96x64xf32> -> vector<96x64xf32>
    %84 = arith.addf %78, %83 : vector<96x64xf32>
    %c0_77 = arith.constant 0 : index
    %c28 = arith.constant 28 : index
    %c0_78 = arith.constant 0 : index
    %85 = vector.load %arg1[%c0_77, %c28, %c0_78] : memref<1x156x96xbf16, #tpu.memory_space<vmem>>, vector<1x96x96xbf16>
    %86 = vector.shape_cast %85 : vector<1x96x96xbf16> to vector<96x96xbf16>
    %c14_79 = arith.constant 14 : index
    %c0_80 = arith.constant 0 : index
    %c0_81 = arith.constant 0 : index
    %87 = vector.load %arg2[%c14_79, %c0_80, %c0_81] : memref<25x96x64xbf16, #tpu.memory_space<vmem>>, vector<1x96x64xbf16>
    %88 = vector.shape_cast %87 : vector<1x96x64xbf16> to vector<96x64xbf16>
    %cst_82 = arith.constant dense<0.000000e+00> : vector<96x64xf32>
    %89 = tpu.matmul %86, %88, %cst_82 {dimension_numbers = #tpu.dot_dimension_numbers<[1], [0], [0], [1], [0, 0, 1, 1], [], []>} : vector<96x96xbf16>, vector<96x64xbf16>, vector<96x64xf32> -> vector<96x64xf32>
    %90 = arith.addf %84, %89 : vector<96x64xf32>
    %c0_83 = arith.constant 0 : index
    %c36 = arith.constant 36 : index
    %c0_84 = arith.constant 0 : index
    %91 = vector.load %arg1[%c0_83, %c36, %c0_84] : memref<1x156x96xbf16, #tpu.memory_space<vmem>>, vector<1x96x96xbf16>
    %92 = vector.shape_cast %91 : vector<1x96x96xbf16> to vector<96x96xbf16>
    %c15_85 = arith.constant 15 : index
    %c0_86 = arith.constant 0 : index
    %c0_87 = arith.constant 0 : index
    %93 = vector.load %arg2[%c15_85, %c0_86, %c0_87] : memref<25x96x64xbf16, #tpu.memory_space<vmem>>, vector<1x96x64xbf16>
    %94 = vector.shape_cast %93 : vector<1x96x64xbf16> to vector<96x64xbf16>
    %cst_88 = arith.constant dense<0.000000e+00> : vector<96x64xf32>
    %95 = tpu.matmul %92, %94, %cst_88 {dimension_numbers = #tpu.dot_dimension_numbers<[1], [0], [0], [1], [0, 0, 1, 1], [], []>} : vector<96x96xbf16>, vector<96x64xbf16>, vector<96x64xf32> -> vector<96x64xf32>
    %96 = arith.addf %90, %95 : vector<96x64xf32>
    %c0_89 = arith.constant 0 : index
    %c37 = arith.constant 37 : index
    %c0_90 = arith.constant 0 : index
    %97 = vector.load %arg1[%c0_89, %c37, %c0_90] : memref<1x156x96xbf16, #tpu.memory_space<vmem>>, vector<1x96x96xbf16>
    %98 = vector.shape_cast %97 : vector<1x96x96xbf16> to vector<96x96xbf16>
    %c16_91 = arith.constant 16 : index
    %c0_92 = arith.constant 0 : index
    %c0_93 = arith.constant 0 : index
    %99 = vector.load %arg2[%c16_91, %c0_92, %c0_93] : memref<25x96x64xbf16, #tpu.memory_space<vmem>>, vector<1x96x64xbf16>
    %100 = vector.shape_cast %99 : vector<1x96x64xbf16> to vector<96x64xbf16>
    %cst_94 = arith.constant dense<0.000000e+00> : vector<96x64xf32>
    %101 = tpu.matmul %98, %100, %cst_94 {dimension_numbers = #tpu.dot_dimension_numbers<[1], [0], [0], [1], [0, 0, 1, 1], [], []>} : vector<96x96xbf16>, vector<96x64xbf16>, vector<96x64xf32> -> vector<96x64xf32>
    %102 = arith.addf %96, %101 : vector<96x64xf32>
    %c0_95 = arith.constant 0 : index
    %c38 = arith.constant 38 : index
    %c0_96 = arith.constant 0 : index
    %103 = vector.load %arg1[%c0_95, %c38, %c0_96] : memref<1x156x96xbf16, #tpu.memory_space<vmem>>, vector<1x96x96xbf16>
    %104 = vector.shape_cast %103 : vector<1x96x96xbf16> to vector<96x96xbf16>
    %c17 = arith.constant 17 : index
    %c0_97 = arith.constant 0 : index
    %c0_98 = arith.constant 0 : index
    %105 = vector.load %arg2[%c17, %c0_97, %c0_98] : memref<25x96x64xbf16, #tpu.memory_space<vmem>>, vector<1x96x64xbf16>
    %106 = vector.shape_cast %105 : vector<1x96x64xbf16> to vector<96x64xbf16>
    %cst_99 = arith.constant dense<0.000000e+00> : vector<96x64xf32>
    %107 = tpu.matmul %104, %106, %cst_99 {dimension_numbers = #tpu.dot_dimension_numbers<[1], [0], [0], [1], [0, 0, 1, 1], [], []>} : vector<96x96xbf16>, vector<96x64xbf16>, vector<96x64xf32> -> vector<96x64xf32>
    %108 = arith.addf %102, %107 : vector<96x64xf32>
    %c0_100 = arith.constant 0 : index
    %c39 = arith.constant 39 : index
    %c0_101 = arith.constant 0 : index
    %109 = vector.load %arg1[%c0_100, %c39, %c0_101] : memref<1x156x96xbf16, #tpu.memory_space<vmem>>, vector<1x96x96xbf16>
    %110 = vector.shape_cast %109 : vector<1x96x96xbf16> to vector<96x96xbf16>
    %c18 = arith.constant 18 : index
    %c0_102 = arith.constant 0 : index
    %c0_103 = arith.constant 0 : index
    %111 = vector.load %arg2[%c18, %c0_102, %c0_103] : memref<25x96x64xbf16, #tpu.memory_space<vmem>>, vector<1x96x64xbf16>
    %112 = vector.shape_cast %111 : vector<1x96x64xbf16> to vector<96x64xbf16>
    %cst_104 = arith.constant dense<0.000000e+00> : vector<96x64xf32>
    %113 = tpu.matmul %110, %112, %cst_104 {dimension_numbers = #tpu.dot_dimension_numbers<[1], [0], [0], [1], [0, 0, 1, 1], [], []>} : vector<96x96xbf16>, vector<96x64xbf16>, vector<96x64xf32> -> vector<96x64xf32>
    %114 = arith.addf %108, %113 : vector<96x64xf32>
    %c0_105 = arith.constant 0 : index
    %c40 = arith.constant 40 : index
    %c0_106 = arith.constant 0 : index
    %115 = vector.load %arg1[%c0_105, %c40, %c0_106] : memref<1x156x96xbf16, #tpu.memory_space<vmem>>, vector<1x96x96xbf16>
    %116 = vector.shape_cast %115 : vector<1x96x96xbf16> to vector<96x96xbf16>
    %c19 = arith.constant 19 : index
    %c0_107 = arith.constant 0 : index
    %c0_108 = arith.constant 0 : index
    %117 = vector.load %arg2[%c19, %c0_107, %c0_108] : memref<25x96x64xbf16, #tpu.memory_space<vmem>>, vector<1x96x64xbf16>
    %118 = vector.shape_cast %117 : vector<1x96x64xbf16> to vector<96x64xbf16>
    %cst_109 = arith.constant dense<0.000000e+00> : vector<96x64xf32>
    %119 = tpu.matmul %116, %118, %cst_109 {dimension_numbers = #tpu.dot_dimension_numbers<[1], [0], [0], [1], [0, 0, 1, 1], [], []>} : vector<96x96xbf16>, vector<96x64xbf16>, vector<96x64xf32> -> vector<96x64xf32>
    %120 = arith.addf %114, %119 : vector<96x64xf32>
    %c0_110 = arith.constant 0 : index
    %c48 = arith.constant 48 : index
    %c0_111 = arith.constant 0 : index
    %121 = vector.load %arg1[%c0_110, %c48, %c0_111] : memref<1x156x96xbf16, #tpu.memory_space<vmem>>, vector<1x96x96xbf16>
    %122 = vector.shape_cast %121 : vector<1x96x96xbf16> to vector<96x96xbf16>
    %c20 = arith.constant 20 : index
    %c0_112 = arith.constant 0 : index
    %c0_113 = arith.constant 0 : index
    %123 = vector.load %arg2[%c20, %c0_112, %c0_113] : memref<25x96x64xbf16, #tpu.memory_space<vmem>>, vector<1x96x64xbf16>
    %124 = vector.shape_cast %123 : vector<1x96x64xbf16> to vector<96x64xbf16>
    %cst_114 = arith.constant dense<0.000000e+00> : vector<96x64xf32>
    %125 = tpu.matmul %122, %124, %cst_114 {dimension_numbers = #tpu.dot_dimension_numbers<[1], [0], [0], [1], [0, 0, 1, 1], [], []>} : vector<96x96xbf16>, vector<96x64xbf16>, vector<96x64xf32> -> vector<96x64xf32>
    %126 = arith.addf %120, %125 : vector<96x64xf32>
    %c0_115 = arith.constant 0 : index
    %c49 = arith.constant 49 : index
    %c0_116 = arith.constant 0 : index
    %127 = vector.load %arg1[%c0_115, %c49, %c0_116] : memref<1x156x96xbf16, #tpu.memory_space<vmem>>, vector<1x96x96xbf16>
    %128 = vector.shape_cast %127 : vector<1x96x96xbf16> to vector<96x96xbf16>
    %c21 = arith.constant 21 : index
    %c0_117 = arith.constant 0 : index
    %c0_118 = arith.constant 0 : index
    %129 = vector.load %arg2[%c21, %c0_117, %c0_118] : memref<25x96x64xbf16, #tpu.memory_space<vmem>>, vector<1x96x64xbf16>
    %130 = vector.shape_cast %129 : vector<1x96x64xbf16> to vector<96x64xbf16>
    %cst_119 = arith.constant dense<0.000000e+00> : vector<96x64xf32>
    %131 = tpu.matmul %128, %130, %cst_119 {dimension_numbers = #tpu.dot_dimension_numbers<[1], [0], [0], [1], [0, 0, 1, 1], [], []>} : vector<96x96xbf16>, vector<96x64xbf16>, vector<96x64xf32> -> vector<96x64xf32>
    %132 = arith.addf %126, %131 : vector<96x64xf32>
    %c0_120 = arith.constant 0 : index
    %c50 = arith.constant 50 : index
    %c0_121 = arith.constant 0 : index
    %133 = vector.load %arg1[%c0_120, %c50, %c0_121] : memref<1x156x96xbf16, #tpu.memory_space<vmem>>, vector<1x96x96xbf16>
    %134 = vector.shape_cast %133 : vector<1x96x96xbf16> to vector<96x96xbf16>
    %c22 = arith.constant 22 : index
    %c0_122 = arith.constant 0 : index
    %c0_123 = arith.constant 0 : index
    %135 = vector.load %arg2[%c22, %c0_122, %c0_123] : memref<25x96x64xbf16, #tpu.memory_space<vmem>>, vector<1x96x64xbf16>
    %136 = vector.shape_cast %135 : vector<1x96x64xbf16> to vector<96x64xbf16>
    %cst_124 = arith.constant dense<0.000000e+00> : vector<96x64xf32>
    %137 = tpu.matmul %134, %136, %cst_124 {dimension_numbers = #tpu.dot_dimension_numbers<[1], [0], [0], [1], [0, 0, 1, 1], [], []>} : vector<96x96xbf16>, vector<96x64xbf16>, vector<96x64xf32> -> vector<96x64xf32>
    %138 = arith.addf %132, %137 : vector<96x64xf32>
    %c0_125 = arith.constant 0 : index
    %c51 = arith.constant 51 : index
    %c0_126 = arith.constant 0 : index
    %139 = vector.load %arg1[%c0_125, %c51, %c0_126] : memref<1x156x96xbf16, #tpu.memory_space<vmem>>, vector<1x96x96xbf16>
    %140 = vector.shape_cast %139 : vector<1x96x96xbf16> to vector<96x96xbf16>
    %c23 = arith.constant 23 : index
    %c0_127 = arith.constant 0 : index
    %c0_128 = arith.constant 0 : index
    %141 = vector.load %arg2[%c23, %c0_127, %c0_128] : memref<25x96x64xbf16, #tpu.memory_space<vmem>>, vector<1x96x64xbf16>
    %142 = vector.shape_cast %141 : vector<1x96x64xbf16> to vector<96x64xbf16>
    %cst_129 = arith.constant dense<0.000000e+00> : vector<96x64xf32>
    %143 = tpu.matmul %140, %142, %cst_129 {dimension_numbers = #tpu.dot_dimension_numbers<[1], [0], [0], [1], [0, 0, 1, 1], [], []>} : vector<96x96xbf16>, vector<96x64xbf16>, vector<96x64xf32> -> vector<96x64xf32>
    %144 = arith.addf %138, %143 : vector<96x64xf32>
    %c0_130 = arith.constant 0 : index
    %c52 = arith.constant 52 : index
    %c0_131 = arith.constant 0 : index
    %145 = vector.load %arg1[%c0_130, %c52, %c0_131] : memref<1x156x96xbf16, #tpu.memory_space<vmem>>, vector<1x96x96xbf16>
    %146 = vector.shape_cast %145 : vector<1x96x96xbf16> to vector<96x96xbf16>
    %c24_132 = arith.constant 24 : index
    %c0_133 = arith.constant 0 : index
    %c0_134 = arith.constant 0 : index
    %147 = vector.load %arg2[%c24_132, %c0_133, %c0_134] : memref<25x96x64xbf16, #tpu.memory_space<vmem>>, vector<1x96x64xbf16>
    %148 = vector.shape_cast %147 : vector<1x96x64xbf16> to vector<96x64xbf16>
    %cst_135 = arith.constant dense<0.000000e+00> : vector<96x64xf32>
    %149 = tpu.matmul %146, %148, %cst_135 {dimension_numbers = #tpu.dot_dimension_numbers<[1], [0], [0], [1], [0, 0, 1, 1], [], []>} : vector<96x96xbf16>, vector<96x64xbf16>, vector<96x64xf32> -> vector<96x64xf32>
    %150 = arith.addf %144, %149 : vector<96x64xf32>
    %151 = arith.truncf %150 : vector<96x64xf32> to vector<96x64xbf16>
    %152 = vector.shape_cast %151 : vector<96x64xbf16> to vector<1x96x64xbf16>
    %c0_136 = arith.constant 0 : index
    %c0_137 = arith.constant 0 : index
    %c0_138 = arith.constant 0 : index
    %153 = vector.load %arg4[%c0_136, %c0_137, %c0_138] : memref<1x96x64xbf16, #tpu.memory_space<vmem>>, vector<1x96x64xbf16>
    tpu.vector_store %arg4[%c0_136, %c0_137, %c0_138], %152 {strides = array<i32>} : memref<1x96x64xbf16, #tpu.memory_space<vmem>>, vector<1x96x64xbf16>,
    %c0_139 = arith.constant 0 : index
    %c0_140 = arith.constant 0 : index
    %154 = vector.load %arg3[%c0_139, %c0_140] : memref<96x64xf32, #tpu.memory_space<vmem>>, vector<96x64xf32>
    %155 = arith.mulf %150, %154 : vector<96x64xf32>
    %cst_141 = arith.constant dense<0.000000e+00> : vector<64xf32>
    %156 = vector.multi_reduction <add>, %155, %cst_141 [0] : vector<96x64xf32> to vector<64xf32>
    %157 = vector.shape_cast %156 : vector<64xf32> to vector<1x64xf32>
    %158 = arith.mulf %150, %155 : vector<96x64xf32>
    %cst_142 = arith.constant dense<0.000000e+00> : vector<64xf32>
    %159 = vector.multi_reduction <add>, %158, %cst_142 [0] : vector<96x64xf32> to vector<64xf32>
    %160 = vector.shape_cast %159 : vector<64xf32> to vector<1x64xf32>
    %161 = tpu.concatenate %157, %160 in 0 : vector<1x64xf32>, vector<1x64xf32> -> vector<2x64xf32>
    %162 = vector.shape_cast %161 : vector<2x64xf32> to vector<1x2x64xf32>
    %c0_143 = arith.constant 0 : index
    %c0_144 = arith.constant 0 : index
    %c0_145 = arith.constant 0 : index
    %163 = vector.load %arg5[%c0_143, %c0_144, %c0_145] : memref<1x2x64xf32, #tpu.memory_space<vmem>>, vector<1x2x64xf32>
    tpu.vector_store %arg5[%c0_143, %c0_144, %c0_145], %162 {strides = array<i32>} : memref<1x2x64xf32, #tpu.memory_space<vmem>>, vector<1x2x64xf32>,
    return
  }
  func.func @transform_0(%arg0: i32) -> (i32, i32, i32) {
    %c0_i32 = arith.constant 0 : i32
    %c0_i32_0 = arith.constant 0 : i32
    %c0_i32_1 = arith.constant 0 : i32
    return %arg0, %c0_i32, %c0_i32_0 : i32, i32, i32
  }
  func.func @transform_1(%arg0: i32) -> (i32, i32, i32) {
    %c0_i32 = arith.constant 0 : i32
    %c0_i32_0 = arith.constant 0 : i32
    %c0_i32_1 = arith.constant 0 : i32
    %c0_i32_2 = arith.constant 0 : i32
    return %c0_i32, %c0_i32_0, %c0_i32_1 : i32, i32, i32
  }
  func.func @transform_2(%arg0: i32) -> (i32, i32) {
    %c0_i32 = arith.constant 0 : i32
    %c0_i32_0 = arith.constant 0 : i32
    %c0_i32_1 = arith.constant 0 : i32
    return %c0_i32, %c0_i32_0 : i32, i32
  }
  func.func @transform_3(%arg0: i32) -> (i32, i32, i32) {
    %c0_i32 = arith.constant 0 : i32
    %c0_i32_0 = arith.constant 0 : i32
    %c0_i32_1 = arith.constant 0 : i32
    return %arg0, %c0_i32, %c0_i32_0 : i32, i32, i32
  }
  func.func @transform_4(%arg0: i32) -> (i32, i32, i32) {
    %c0_i32 = arith.constant 0 : i32
    %c0_i32_0 = arith.constant 0 : i32
    %c0_i32_1 = arith.constant 0 : i32
    return %arg0, %c0_i32, %c0_i32_0 : i32, i32, i32
  }
}

</mosaic_0001>

<bundles_post_ra>
// kernel: tpu_custom_call.1
= control target key start
LH: loop header
LB: loop body
LE: loop exit
PB: predicated region body
PF: predicated region fallthrough
CT: control target
= control target key end

     0   :  { %10 = vsyncpa [#allocation3], 0  ;;  %s9345_s0 = inlined_call_operand.vmem [shape: bf16[2,156,96], index: 0, kind: input, shape index: {}]   ;;  %s9346_s1 = inlined_call_operand.vmem [shape: bf16[25,96,64], index: 1, kind: input, shape index: {}]   ;;  %s9347_s2 = inlined_call_operand.vmem [shape: f32[96,64], index: 2, kind: input, shape index: {}]   ;;  %s9348_s3 = inlined_call_operand.vmem [shape: bf16[2,96,64], index: 3, kind: output, shape index: {0}]   ;;  %s9349_s4 = inlined_call_operand.hbm [shape: f32[2,2,64], index: 4, kind: output, shape index: {1}]  }
   0x1   :  { %12 = vsyncpa [#allocation3 + $0x1], 0  ;;  %s7696_s15 = smov 0   ;;  %s7698_s16 = smov 0  }
   0x2   :  { %s7700_s17 = smov 0   ;;  %s7702_s18 = smov 0  }
   0x3 LB: > { %s7717_s19 = sadd.s32 4294967295, %s7668_s18   ;;  %s5434_s20 = sadd.s32 4294967294, %s7668_s18   ;;  %s7668_s18 = sphi %s7702_s18, %s9411_s18   ;;  %s7664_s17 = sphi %s7700_s17, %s9410_s17   ;;  %s7660_s16 = sphi %s7698_s16, %s9409_s16   ;;  %s7656_s15 = sphi %s7696_s15, %s9408_s15  }
   0x4   : > { %s7721_s21 = sadd.s32 1, %s7668_s18   ;;  %s119_s22 = sadd.s32 1, %s7664_s17 }
   0x5   : > { %s116_s23 = ssub.s32 %s7668_s18, %s7721_s21  ;;  %p129_p0 = scmp.ne.s32.totalorder %s7664_s17, %s7660_s16 }
   0x6   : > { %p117_p1 = scmp.eq.s32.totalorder %s116_s23, 0  ;;  %p130_p2 = scmp.eq.s32.totalorder %s7717_s19, 1 }
   0x7   : > { %p135_p3 = scmp.ne.s32.totalorder %s7660_s16, %s7656_s15  ;;  %p136_p4 = scmp.eq.s32.totalorder %s5434_s20, 1 }
   0x8   : > { %s7732_s24 = scalar_select %p117_p1, %s7664_s17, %s119_s22  }
   0x9   : > { %p7734_p5 = por %p130_p2, %p129_p0  ;;  %p7738_p6 = por %p136_p4, %p135_p3 }
   0xa   : > { %p5437_p7 = scmp.ge.s32.totalorder %s7668_s18, 1  ;;  %p168_p8 = scmp.lt.s32.totalorder %s7668_s18, 3 }
   0xc   : > { %p169_p9 = pnand %p5437_p7, %p168_p8 }
   0xd   : > { %v7372_v0 = vld [vmem:[%s9346_s1 + $0x30] sm:$0xff] (!%p169_p9)   ;;  %p199_p10 = scmp.lt.s32.totalorder (!%p169_p9), %s7717_s19, 1  ;;  %v7373_v1 = vld [vmem:[%s9346_s1 + $0x240] sm:$0xff] (!%p169_p9)   ;;  %v7374_v2 = vld [vmem:[%s9346_s1 + $0x38] sm:$0xff] (!%p169_p9)   ;;  %vm370_vm0 = vcmask (!%p169_p9), 785408   ;;  %vm616_vm1 = vcmask (!%p169_p9), 1046528  }
   0xe   : > { %172 = sbr.rel (%p169_p9) target bundleno = 598 (0x256), region = 32  ;;  %6431 = vmatprep.subr.bf16.mxu1 (!%p169_p9), %v7372_v0  ;;  %6719 = vmatprep.subr.bf16.mxu0 (!%p169_p9), %v7373_v1  ;;  %v7375_v3 = vld [vmem:[%s9346_s1 + $0x248] sm:$0xff] (!%p169_p9)   ;;  %v7376_v4 = vld [vmem:[%s9346_s1 + $0x40] sm:$0xff] (!%p169_p9)   ;;  %v7377_v5 = vld [vmem:[%s9346_s1 + $0x250] sm:$0xff] (!%p169_p9)   ;;  %vm281_vm2 = vsmask.f32 (!%p169_p9), 7424 }
   0xf   : > { %6432 = vmatpush3.bf16.msra.mxu1 (!%p169_p9), %v7372_v0  ;;  %6720 = vmatpush3.bf16.msra.mxu0 (!%p169_p9), %v7373_v1  ;;  %v7378_v6 = vld [vmem:[%s9346_s1 + $0x48] sm:$0xff] (!%p169_p9)   ;;  %v7379_v7 = vld [vmem:[%s9346_s1 + $0x258] sm:$0xff] (!%p169_p9)   ;;  %v7380_v8 = vld [vmem:[%s9346_s1 + $0x50] sm:$0xff] (!%p169_p9)   ;;  %vm794_vm3 = vsmask.f32 (!%p169_p9), 6400  ;;  %vm996_vm4 = vcmask (!%p169_p9), 1045504  }
  0x10   : > { %6433 = vmatprep.subr.bf16.mxu1 (!%p169_p9), %v7374_v2  ;;  %6721 = vmatprep.subr.bf16.mxu0 (!%p169_p9), %v7375_v3  ;;  %v7381_v9 = vld [vmem:[%s9346_s1 + $0x260] sm:$0xff] (!%p169_p9)   ;;  %v7382_v15 = vld [vmem:[%s9346_s1 + $0x58] sm:$0xff] (!%p169_p9)   ;;  %v7383_v17 = vld [vmem:[%s9346_s1 + $0x268] sm:$0xff] (!%p169_p9)   ;;  %vm1393_vm5 = vsmask.f32 (!%p169_p9), 5376  ;;  %vm1620_vm6 = vcmask (!%p169_p9), 1044480  }
  0x11   : > { %v7389_v36 = vld [vmem:[%s9346_s1] sm:$0xff] (!%p169_p9)   ;;  %v7391_v40 = vld [vmem:[%s9346_s1 + $0x270] sm:$0xff] (!%p169_p9)   ;;  %v7392_v41 = vld [vmem:[%s9346_s1 + $0x8] sm:$0xff] (!%p169_p9)   ;;  %vm1798_vm7 = vsmask.f32 (!%p169_p9), 4352  ;;  %vm5216_vm8 = vcmask (!%p169_p9), 519168  }
  0x12   : > { %v7393_v47 = vld [vmem:[%s9346_s1 + $0x278] sm:$0xff] (!%p169_p9)   ;;  %v7397_v58 = vld [vmem:[%s9346_s1 + $0x10] sm:$0xff] (!%p169_p9)   ;;  %v7399_v63 = vld [vmem:[%s9346_s1 + $0x280] sm:$0xff] (!%p169_p9)   ;;  %vm5253_vm9 = vcmask (!%p169_p9), 523264   ;;  %vm5324_vm10 = vcmask (!%p169_p9), 1040384   ;;  %vm5326_vm11 = vcmask (!%p169_p9), 517120  }
  0x13   : > { %6434 = vmatpush3.bf16.msra.mxu1 (!%p169_p9), %v7374_v2  ;;  %6722 = vmatpush3.bf16.msra.mxu0 (!%p169_p9), %v7375_v3  ;;  %v7400_v0 = vld [vmem:[%s9346_s1 + $0x18] sm:$0xff] (!%p169_p9)   ;;  %v7401_v3 = vld [vmem:[%s9346_s1 + $0x288] sm:$0xff] (!%p169_p9)  }
  0x14   : > { %6435 = vmatprep.subr.bf16.mxu1 (!%p169_p9), %v7376_v4  ;;  %6723 = vmatprep.subr.bf16.mxu0 (!%p169_p9), %v7377_v5 }
  0x15   : > { %s7755_s7 = scalar_select %p199_p10, %s7717_s19, 1 }
  0x17   : > { %s7331_s14 = smul.u32 80, %s7755_s7  ;;  %6436 = vmatpush3.bf16.msra.mxu1 %v7376_v4  ;;  %6724 = vmatpush3.bf16.msra.mxu0 %v7377_v5 }
  0x18   : > { %6437 = vmatprep.subr.bf16.mxu1 %v7378_v6  ;;  %6725 = vmatprep.subr.bf16.mxu0 %v7379_v7  ;;  %s7332_s28 = smul.u32 48, %s7755_s7  ;;  %s7670_s7 = smov [#allocation2]  }
  0x19   : > { %s7776_s30 = scalar_lea.vmem %s9345_s0, %s7331_s14  ;;  %s7610_s8 = sshll.u32 %s7670_s7, 4  ;;  %s7611_s8 = int_to_ptr.vmem [resolvable:$false] %s7610_s8 }
  0x1a   : > { %v210_v10 = vld [vmem:[%s7776_s30] sm:$0xf]  ;;  %v7786_v11 = vld [vmem:[%s7776_s30 + $0x4] sm:$0xf]  ;;  %v7792_v13 = vld [vmem:[%s7776_s30 + $0x8] sm:$0xff]   ;;  %s9187_s6 = scalar_lea.vmem %s9348_s3, %s7332_s28  ;;  %s7612_s9 = scalar_lea.vmem %s7611_s8, 64 }
  0x1b   : > { %v7789_v12 = vcombine.low %v210_v10, %v7786_v11  ;;  %v7795_v14 = vld [vmem:[%s7776_s30 + $0x14] sm:$0xff]   ;;  %v7801_v16 = vld [vmem:[%s7776_s30 + $0x10] sm:$0xf]  ;;  %6438 = vmatpush3.bf16.msra.mxu1 %v7378_v6  ;;  %v290_v20 = vshll.u32 %v7792_v13, 16  ;;  %v294_v21 = vshrl.u32 %v7792_v13, 16  ;;  %6726 = vmatpush3.bf16.msra.mxu0 %v7379_v7  ;;  %v7825_v32 = vld [vmem:[%s7776_s30 + $0x1c] sm:$0xff]  }
  0x1c   : > { %v2609_v22 = vld [vmem:[%s7776_s30 + $0xc] sm:$0xe]  ;;  %6439 = vmatprep.subr.bf16.mxu1 %v7380_v8  ;;  %v2627_v24 = vrot.slane %v7795_v14, 1  ;;  %v7816_v25 = vld [vmem:[%s7776_s30 + $0x10] sm:$0xff]   ;;  %6727 = vmatprep.subr.bf16.mxu0 %v7381_v9  ;;  %v2629_v39 = vrot.slane %v7825_v32, 1  ;;  %v7844_v43 = vld [vmem:[%s7776_s30 + $0x18] sm:$0xff]  }
  0x1d   : > { %v283_v18 = vshrl.u32 %v7789_v12, 16  ;;  %v285_v19 = vshll.u32 %v7789_v12, 16  ;;  %v7812_v23 = vcombine.low %v2609_v22, %v7801_v16  ;;  %v292_v27 = vrot.slane %v290_v20, 1  ;;  %v7848_v46 = vld [vmem:[%s7776_s30 + $0x24] sm:$0xff]   ;;  %v7863_v54 = vld [vmem:[%s7776_s30 + $0x2c] sm:$0xff]   ;;  %v7897_v6 = vld [vmem:[%s7776_s30 + $0x34] sm:$0xff]  }
  0x1e   : > { %v298_v29 = vshll.u32 %v7816_v25, 16  ;;  %v302_v37 = vshrl.u32 %v7816_v25, 16  ;;  %v2630_v45 = vsel %vm616_vm1, %v2627_v24, %v2629_v39  ;;  %v306_v49 = vshll.u32 %v7844_v43, 16  ;;  %v7855_v50 = vld [vmem:[%s7776_s30 + $0x20] sm:$0xff]   ;;  %v7893_v4 = vld [vmem:[%s7776_s30 + $0x28] sm:$0xff]  }
  0x1f   : > { %v287_v26 = vrot.slane %v285_v19, 1  ;;  %v2626_v28 = vrot.slane %v7812_v23, 1  ;;  %6440 = vmatpush3.bf16.msra.mxu1 %v7380_v8  ;;  %v296_v31 = vor.u32 %v294_v21, %v292_v27  ;;  %6728 = vmatpush3.bf16.msra.mxu0 %v7381_v9  ;;  %v310_v51 = vshrl.u32 %v7844_v43, 16  ;;  %v7904_v10 = vld [vmem:[%s7776_s30 + $0x30] ss:$0 sps:$4 sm:$0x11]  }
  0x20   : > { %6441 = vmatprep.subr.bf16.mxu1 %v7382_v15  ;;  %v300_v34 = vrot.slane %v298_v29, 1  ;;  %v808_v35 = vrot.slane %v298_v29, 2  ;;  %6729 = vmatprep.subr.bf16.mxu0 %v7383_v17  ;;  %v807_v44 = vrot.slane %v302_v37, 1  ;;  %v2631_v53 = vrot.slane %v7848_v46, 1 }
  0x21   : > { %v288_v30 = vor.u32 %v287_v26, %v283_v18  ;;  %v2628_v33 = vsel %vm616_vm1, %v2626_v28, %v2627_v24  ;;  %v308_v55 = vrot.slane %v306_v49, 1  ;;  %v314_v56 = vshll.u32 %v7855_v50, 16  ;;  %v7406_v28 = vld [vmem:[%s7776_s30 + $0x3c] ss:$0 sps:$4 sm:$0x11]  }
  0x22   : > { %6731 = vmatprep.mubr.msk.bf16.mxu0 %vm370_vm0, %v2628_v33  ;;  %v301_v42 = vsel %vm281_vm2, %v296_v31, %v300_v34  ;;  %v304_v48 = vor.u32 %v302_v37, %v300_v34  ;;  %v7858_v52 = vor.u32 %v808_v35, %v807_v44  ;;  %v2632_v57 = vsel %vm616_vm1, %v2629_v39, %v2631_v53  ;;  %v7407_v33 = vld [vmem:[%s9346_s1 + $0x290] sm:$0xff]  }
  0x23   : > { %v293_v38 = vsel %vm281_vm2, %v288_v30, %v292_v27  ;;  %6442 = vmatpush3.bf16.msra.mxu1 %v7382_v15  ;;  %6730 = vmatpush3.bf16.msra.mxu0 %v7383_v17  ;;  %v2633_v59 = vrot.slane %v7863_v54, 1  ;;  %v312_v61 = vor.u32 %v310_v51, %v308_v55  ;;  %v316_v62 = vrot.slane %v314_v56, 1  ;;  %v7405_v27 = vld [vmem:[%s9346_s1 + $0x20] sm:$0xff]  }
  0x24   : > { %6443 = vmatprep.mubr.msk.bf16.mxu1 %vm370_vm0, %v293_v38  ;;  %6455 = vmatprep.subr.bf16.mxu1 %v7389_v36  ;;  %v309_v60 = vsel %vm281_vm2, %v304_v48, %v308_v55  ;;  %v318_v1 = vshrl.u32 %v7855_v50, 16  ;;  %v2804_v7 = vshrl.u32 %v7812_v23, 16  ;;  %v322_v9 = vshll.u32 %v7893_v4, 16 }
  0x25   : > { %6743 = vmatprep.subr.bf16.mxu0 %v7391_v40  ;;  %v317_v2 = vsel %vm281_vm2, %v312_v61, %v316_v62  ;;  %v2634_v5 = vsel %vm616_vm1, %v2631_v53, %v2633_v59  ;;  %v2635_v15 = vrot.slane %v7897_v6, 1  ;;  %v326_v17 = vshrl.u32 %v7893_v4, 16  ;;  %v7410_v53 = vld [vmem:[%s9346_s1 + $0x60] sm:$0xff]  }
  0x26   : > { %6444 = vmatmul.mubr.msk.bf16.vlgmr.msra.gmra.mrb[0].mxu1 %vm370_vm0, %v301_v42  ;;  %6732 = vmatmul.mubr.msk.bf16.vlgmr.msra.gmra.mrb[0].mxu0 %vm370_vm0, %v2630_v45  ;;  %v320_v8 = vor.u32 %v318_v1, %v316_v62  ;;  %v324_v18 = vrot.slane %v322_v9, 1  ;;  %v330_v19 = vshll.u32 %v7904_v10, 16  ;;  %v9359_v22 = vshll.u32 %v7795_v14, 16  ;;  %v7409_v42 = vld [vmem:[%s9346_s1 + $0x298] sm:$0xff]   ;;  %v7411_v62 = vld [vmem:[%s9346_s1 + $0x2a0] sm:$0xff]  }
  0x27   : > { %6456 = vmatpush3.bf16.msra.mxu1 %v7389_v36  ;;  %6744 = vmatpush3.bf16.msra.mxu0 %v7391_v40  ;;  %v9357_v24 = vshrl.u32 %v7795_v14, 16  ;;  %v2636_v26 = vsel %vm616_vm1, %v2633_v59, %v2635_v15  ;;  %v2637_v34 = vrot.slane %v7406_v28, 1  ;;  %v2806_v35 = vrot.slane %v2804_v7, 1  ;;  %v7408_v40 = vld [vmem:[%s9346_s1 + $0x28] sm:$0xff]  }
  0x28   : > { %6457 = vmatprep.subr.bf16.mxu1 %v7392_v41  ;;  %6745 = vmatprep.subr.bf16.mxu0 %v7393_v47  ;;  %v325_v29 = vsel %vm281_vm2, %v320_v8, %v324_v18  ;;  %v328_v30 = vor.u32 %v326_v17, %v324_v18  ;;  %v332_v31 = vrot.slane %v330_v19, 1  ;;  %v2807_v37 = vshll.u32 %v7812_v23, 16  ;;  %v7413_v19 = vld [vmem:[%s9346_s1 + $0x2a8] sm:$0xff]  }
  0x29   : > { %6735 = vmatprep.mubr.msk.bf16.mxu0 %vm370_vm0, %v2632_v57  ;;  %6447 = vmatprep.mubr.msk.bf16.mxu1 %vm370_vm0, %v309_v60  ;;  %v2811_v38 = vrot.slane %v9357_v24, 1  ;;  %v2638_v39 = vsel %vm616_vm1, %v2635_v15, %v2637_v34  ;;  %v9358_v44 = vshll.u32 %v7825_v32, 16  ;;  %v9356_v45 = vshrl.u32 %v7825_v32, 16  ;;  %v7415_v34 = vld [vmem:[%s9346_s1 + $0x2b0] sm:$0xff]  }
  0x2a   : > { %v333_v36 = vsel %vm281_vm2, %v328_v30, %v332_v31  ;;  %v2809_v23 = vrot.slane %v2807_v37, 2  ;;  %v9354_v59 = vshrl.u32 %v7848_v46, 16  ;;  %v9351_v18 = vshll.u32 %v7897_v6, 16  ;;  %v7989_v30 = vld [vmem:[%s7776_s30 + $0x3c] ss:$0 sps:$4 sm:$0x33]  }
  0x2b   : > { %6458 = vmatpush3.bf16.msra.mxu1 %v7392_v41  ;;  %6746 = vmatpush3.bf16.msra.mxu0 %v7393_v47  ;;  %v2812_v41 = vrot.slane %v9359_v22, 2  ;;  %v2815_v55 = vrot.slane %v9356_v45, 1  ;;  %v2816_v57 = vrot.slane %v9358_v44, 2  ;;  %v7414_v31 = vld [vmem:[%s9346_s1 + $0x70] sm:$0xff]   ;;  %v7416_v37 = vld [vmem:[%s9346_s1 + $0x78] sm:$0xff]  }
  0x2c   : > { %6459 = vmatprep.subr.bf16.mxu1 %v7397_v58  ;;  %6747 = vmatprep.subr.bf16.mxu0 %v7399_v63  ;;  %v2810_v48 = vor.u32 %v2809_v23, %v2806_v35  ;;  %v2832_v35 = vshrl.u32 %v7989_v30, 16  ;;  %v2987_v23 = vld [vmem:[%s7776_s30 + $0xc] sm:$0xc] }
  0x2d   : > { %v2813_v47 = vor.u32 %v2812_v41, %v2811_v38  ;;  %v2817_v61 = vor.u32 %v2816_v57, %v2815_v55  ;;  %v5818_v55 = vcombine.low %v2987_v23, %v7801_v16  ;;  %v7418_v57 = vld [vmem:[%s9346_s1 + $0x80] sm:$0xff]   ;;  %v618_v16 = vrot.slane %v7792_v13, 1 }
  0x2e   : > { %6448 = vmatmul.mubr.msk.bf16.gmra.mrb[4].mxu1 %vm370_vm0, %v317_v2  ;;  %6736 = vmatmul.mubr.msk.bf16.gmra.mrb[4].mxu0 %vm370_vm0, %v2634_v5  ;;  %v2819_v2 = vrot.slane %v9354_v59, 1  ;;  %v2834_v41 = vrot.slane %v2832_v35, 1  ;;  %v3011_v23 = vrot.slane %v7863_v54, 2 }
  0x2f   : > { %6460 = vmatpush3.bf16.msra.mxu1 %v7397_v58  ;;  %6748 = vmatpush3.bf16.msra.mxu0 %v7399_v63  ;;  %v9355_v58 = vshll.u32 %v7848_v46, 16  ;;  %v2814_v60 = vsel %vm794_vm3, %v2810_v48, %v2813_v47  ;;  %v9353_v63 = vshll.u32 %v7863_v54, 16  ;;  %v2818_v7 = vsel %vm794_vm3, %v2813_v47, %v2817_v61  ;;  %v7417_v47 = vld [vmem:[%s9346_s1 + $0x2b8] sm:$0xff]  }
  0x30   : > { %6461 = vmatprep.subr.bf16.mxu1 %v7400_v0  ;;  %6749 = vmatprep.subr.bf16.mxu0 %v7401_v3 }
  0x31   : > { %6739 = vmatprep.mubr.msk.bf16.mxu0 %vm370_vm0, %v2636_v26  ;;  %6451 = vmatprep.mubr.msk.bf16.mxu1 %vm370_vm0, %v325_v29  ;;  %v2824_v15 = vrot.slane %v9353_v63, 2  ;;  %v9350_v26 = vshrl.u32 %v7897_v6, 16  ;;  %v8322_v63 = vld [vmem:[%s7776_s30 + $0x14] sm:$0xf] }
  0x33   : > { %6462 = vmatpush3.bf16.msra.mxu1 %v7400_v0  ;;  %6750 = vmatpush3.bf16.msra.mxu0 %v7401_v3  ;;  %v9352_v0 = vshrl.u32 %v7863_v54, 16  ;;  %v2820_v3 = vrot.slane %v9355_v58, 2  ;;  %v2827_v29 = vrot.slane %v9350_v26, 1  ;;  %v8312_v26 = vld [vmem:[%s7776_s30 + $0x8] sm:$0xf] }
  0x34   : > { %6463 = vmatprep.subr.bf16.mxu1 %v7405_v27  ;;  %6751 = vmatprep.subr.bf16.mxu0 %v7407_v33 }
  0x35   : > { %v2823_v5 = vrot.slane %v9352_v0, 1  ;;  %v2821_v8 = vor.u32 %v2820_v3, %v2819_v2  ;;  %v3005_v2 = vrot.slane %v7795_v14, 2  ;;  %v8319_v0 = vld [vmem:[%s7776_s30 + $0x10] sm:$0xf] }
  0x36   : > { %6452 = vmatmul.mubr.msk.bf16.gmra.mrb[8].mxu1 %vm370_vm0, %v333_v36  ;;  %6740 = vmatmul.mubr.msk.bf16.gmra.mrb[8].mxu0 %vm370_vm0, %v2638_v39  ;;  %v2835_v36 = vshll.u32 %v7989_v30, 16  ;;  %v599_v39 = vld [vmem:[%s7776_s30] sm:$0xe] }
  0x37   : > { %6464 = vmatpush3.bf16.msra.mxu1 %v7405_v27  ;;  %6752 = vmatpush3.bf16.msra.mxu0 %v7407_v33  ;;  %v2828_v27 = vrot.slane %v9351_v18, 2  ;;  %v2822_v28 = vsel %vm794_vm3, %v2817_v61, %v2821_v8  ;;  %v2825_v33 = vor.u32 %v2824_v15, %v2823_v5  ;;  %v8014_v48 = vcombine.low %v599_v39, %v7786_v11  ;;  %v7420_v11 = vld [vmem:[%s9346_s1 + $0x2c0] sm:$0xff]   ;;  %v7422_v5 = vld [vmem:[%s9346_s1 + $0x2c8] sm:$0xff]  }
  0x38   : > { %6465 = vmatprep.subr.bf16.mxu1 %v7408_v40  ;;  %6753 = vmatprep.subr.bf16.mxu0 %v7409_v42  ;;  %v620_v15 = vrot.slane %v7816_v25, 1  ;;  %v624_v39 = vrot.slane %v7855_v50, 1  ;;  %v8315_v18 = vld [vmem:[%s7776_s30 + $0xc] sm:$0xf] }
  0x39   : > { %6467 = vmatprep.mubr.msk.bf16.mxu1 %vm370_vm0, %v7789_v12  ;;  %6755 = vmatprep.mubr.msk.bf16.mxu0 %vm370_vm0, %v2814_v60  ;;  %v7412_v12 = vld [vmem:[%s9346_s1 + $0x68] sm:$0xff]   ;;  %v2829_v38 = vor.u32 %v2828_v27, %v2827_v29  ;;  %v617_v61 = vrot.slane %v8014_v48, 1  ;;  %v3007_v27 = vrot.slane %v7825_v32, 2  ;;  %v803_v29 = vrot.slane %v294_v21, 1  ;;  %v7428_v21 = vld [vmem:[%s9346_s1 + $0x2d8] sm:$0xff]  }
  0x3b   : > { %6466 = vmatpush3.bf16.msra.mxu1 %v7408_v40  ;;  %6754 = vmatpush3.bf16.msra.mxu0 %v7409_v42  ;;  %v2826_v40 = vsel %vm794_vm3, %v2821_v8, %v2825_v33  ;;  %v2837_v42 = vrot.slane %v2835_v36, 2  ;;  %v619_v8 = vsel %vm616_vm1, %v617_v61, %v618_v16  ;;  %v8068_v36 = vld [vmem:[%s7776_s30 + $0x1c] sm:$0xf]  ;;  %v815_v61 = vrot.slane %v318_v1, 1 }
  0x3c   : > { %6479 = vmatprep.subr.bf16.mxu1 %v7410_v53  ;;  %6767 = vmatprep.subr.bf16.mxu0 %v7411_v62 }
  0x3d   : > { %v2838_v60 = vor.u32 %v2837_v42, %v2834_v41  ;;  %v3008_v42 = vsel %vm996_vm4, %v3005_v2, %v3007_v27 }
  0x3e   : > { %6468 = vmatmul.mubr.msk.bf16.vlgmr.msra.gmra.mrb[0].mxu1 %vm370_vm0, %v7792_v13  ;;  %6756 = vmatmul.mubr.msk.bf16.vlgmr.msra.gmra.mrb[0].mxu0 %vm370_vm0, %v2818_v7  ;;  %v804_v7 = vrot.slane %v290_v20, 2  ;;  %v7425_v20 = vld [vmem:[%s9346_s1 + $0x90] sm:$0xff]   ;;  %v7427_v13 = vld [vmem:[%s9346_s1 + $0x98] sm:$0xff]  }
  0x3f   : > { %6480 = vmatpush3.bf16.msra.mxu1 %v7410_v53  ;;  %6768 = vmatpush3.bf16.msra.mxu0 %v7411_v62  ;;  %v2830_v53 = vsel %vm794_vm3, %v2825_v33, %v2829_v38  ;;  %v3004_v62 = vrot.slane %v5818_v55, 2  ;;  %v2839_v3 = vsel %vm794_vm3, %v2829_v38, %v2838_v60  ;;  %v8061_v33 = vld [vmem:[%s7776_s30 + $0x18] sm:$0xf]  ;;  %v3009_v38 = vrot.slane %v7848_v46, 2 }
  0x40   : > { %6481 = vmatprep.subr.bf16.mxu1 %v7412_v12  ;;  %6769 = vmatprep.subr.bf16.mxu0 %v7413_v19  ;;  %v8065_v35 = vor.u32 %v804_v7, %v803_v29  ;;  %v812_v60 = vrot.slane %v306_v49, 2  ;;  %v626_v49 = vrot.slane %v7893_v4, 1  ;;  %v7431_v29 = vld [vmem:[%s9346_s1 + $0xa8] sm:$0xff]   ;;  %v1157_v7 = vld [vmem:[%s7776_s30 + $0x4] sm:$0xc] }
  0x41   : > { %6471 = vmatprep.mubr.msk.bf16.mxu1 %vm370_vm0, %v7816_v25  ;;  %6759 = vmatprep.mubr.msk.bf16.mxu0 %vm370_vm0, %v2822_v28  ;;  %v7426_v28 = vld [vmem:[%s9346_s1 + $0x2d0] sm:$0xff]   ;;  %v622_v25 = vrot.slane %v7844_v43, 1 }
  0x43   : > { %6482 = vmatpush3.bf16.msra.mxu1 %v7412_v12  ;;  %6770 = vmatpush3.bf16.msra.mxu0 %v7413_v19  ;;  %v7421_v12 = vld [vmem:[%s9346_s1 + $0x88] sm:$0xff]   ;;  %v3006_v19 = vsel %vm996_vm4, %v3004_v62, %v3005_v2  ;;  %v623_v55 = vsel %vm616_vm1, %v620_v15, %v622_v25  ;;  %v816_v62 = vrot.slane %v314_v56, 2 }
  0x44   : > { %6483 = vmatprep.subr.bf16.mxu1 %v7414_v31  ;;  %6771 = vmatprep.subr.bf16.mxu0 %v7415_v34 }
  0x45   : > { %v817_v56 = vor.u32 %v816_v62, %v815_v61  ;;  %v8176_v61 = vcombine.low %v8061_v33, %v8068_v36 }
  0x46   : > { %6472 = vmatmul.mubr.msk.bf16.gmra.mrb[4].mxu1 %vm370_vm0, %v7844_v43  ;;  %6760 = vmatmul.mubr.msk.bf16.gmra.mrb[4].mxu0 %vm370_vm0, %v2826_v40  ;;  %v7430_v43 = vld [vmem:[%s9346_s1 + $0x2e0] sm:$0xff]   ;;  %v8419_v40 = vld [vmem:[%s7776_s30 + $0x2c] sm:$0xf] }
  0x47   : > { %6484 = vmatpush3.bf16.msra.mxu1 %v7414_v31  ;;  %6772 = vmatpush3.bf16.msra.mxu0 %v7415_v34  ;;  %v8058_v31 = vld [vmem:[%s7776_s30 + $0x14] sm:$0xf]  ;;  %v621_v34 = vsel %vm616_vm1, %v618_v16, %v620_v15  ;;  %v7429_v16 = vld [vmem:[%s9346_s1 + $0xa0] sm:$0xff]  }
  0x48   : > { %6485 = vmatprep.subr.bf16.mxu1 %v7416_v37  ;;  %6773 = vmatprep.subr.bf16.mxu0 %v7417_v47 }
  0x49   : > { %6475 = vmatprep.mubr.msk.bf16.mxu1 %vm370_vm0, %v7855_v50  ;;  %6763 = vmatprep.mubr.msk.bf16.mxu0 %vm370_vm0, %v2830_v53  ;;  %v811_v53 = vrot.slane %v310_v51, 1  ;;  %v3010_v51 = vsel %vm996_vm4, %v3007_v27, %v3009_v38  ;;  %v799_v50 = vshll.u32 %v8014_v48, 16 }
  0x4b   : > { %6486 = vmatpush3.bf16.msra.mxu1 %v7416_v37  ;;  %6774 = vmatpush3.bf16.msra.mxu0 %v7417_v47  ;;  %v8071_v37 = vld [vmem:[%s7776_s30 + $0x20] sm:$0xf]  ;;  %v8090_v47 = vsel %vm794_vm3, %v8065_v35, %v7858_v52  ;;  %v813_v2 = vor.u32 %v812_v60, %v811_v53  ;;  %v627_v53 = vsel %vm616_vm1, %v624_v39, %v626_v49 }
  0x4c   : > { %6487 = vmatprep.subr.bf16.mxu1 %v7418_v57  ;;  %6775 = vmatprep.subr.bf16.mxu0 %v7420_v11 }
  0x4d   : > { %v8134_v15 = vsel %vm794_vm3, %v7858_v52, %v813_v2  ;;  %v8141_v27 = vsel %vm794_vm3, %v813_v2, %v817_v56  ;;  %v8148_v52 = vld [vmem:[%s7776_s30 + $0x34] sm:$0xf] }
  0x4e   : > { %6476 = vmatmul.mubr.msk.bf16.gmra.mrb[8].mxu1 %vm370_vm0, %v7893_v4  ;;  %6764 = vmatmul.mubr.msk.bf16.gmra.mrb[8].mxu0 %vm370_vm0, %v2839_v3  ;;  %v8120_v3 = vld [vmem:[%s7776_s30 + $0x2c] sm:$0xf] }
  0x4f   : > { %6488 = vmatpush3.bf16.msra.mxu1 %v7418_v57  ;;  %6776 = vmatpush3.bf16.msra.mxu0 %v7420_v11  ;;  %v8097_v57 = vld [vmem:[%s7776_s30 + $0x24] sm:$0xf]  ;;  %v8102_v11 = vld [vmem:[%s7776_s30 + $0x28] sm:$0xf] }
  0x50   : > { %6489 = vmatprep.subr.bf16.mxu1 %v7421_v12  ;;  %6777 = vmatprep.subr.bf16.mxu0 %v7422_v5  ;;  %v8192_v62 = vcombine.low %v8071_v37, %v8097_v57 }
  0x51   : > { %6491 = vmatprep.mubr.msk.bf16.mxu1 %vm370_vm0, %v619_v8  ;;  %6779 = vmatprep.mubr.msk.bf16.mxu0 %vm370_vm0, %v3006_v19  ;;  %v3013_v8 = vrot.slane %v7897_v6, 2  ;;  %v819_v19 = vrot.slane %v326_v17, 1  ;;  %v820_v17 = vrot.slane %v322_v9, 2 }
  0x53   : > { %6490 = vmatpush3.bf16.msra.mxu1 %v7421_v12  ;;  %6778 = vmatpush3.bf16.msra.mxu0 %v7422_v5  ;;  %v8123_v12 = vld [vmem:[%s7776_s30 + $0x30] sm:$0xf]  ;;  %v796_v5 = vshrl.u32 %v8014_v48, 16  ;;  %v8163_v4 = vor.u32 %v820_v17, %v819_v19  ;;  %v3014_v9 = vsel %vm996_vm4, %v3011_v23, %v3013_v8  ;;  %v7439_v19 = vld [vmem:[%s9346_s1 + $0xc0] sm:$0xff]  }
  0x54   : > { %6503 = vmatprep.subr.bf16.mxu1 %v7425_v20  ;;  %6791 = vmatprep.subr.bf16.mxu0 %v7426_v28  ;;  %v3164_v48 = vld [vmem:[%s7776_s30 + $0x10] sm:$0xc]  ;;  %v8228_v17 = vcombine.low %v8123_v12, %v8148_v52 }
  0x55   : > { %v8172_v60 = vcombine.low %v3164_v48, %v8058_v31  ;;  %v8215_v48 = vcombine.low %v8102_v11, %v8120_v3 }
  0x56   : > { %6492 = vmatmul.mubr.msk.bf16.vlgmr.msra.gmra.mrb[0].mxu1 %vm370_vm0, %v621_v34  ;;  %6780 = vmatmul.mubr.msk.bf16.vlgmr.msra.gmra.mrb[0].mxu0 %vm370_vm0, %v3008_v42  ;;  %v8153_v34 = vld [vmem:[%s7776_s30 + $0x38] sm:$0xf]  ;;  %v9362_v45 = vshll.u32 %v8228_v17, 16 }
  0x57   : > { %6504 = vmatpush3.bf16.msra.mxu1 %v7425_v20  ;;  %6792 = vmatpush3.bf16.msra.mxu0 %v7426_v28  ;;  %v625_v20 = vsel %vm616_vm1, %v622_v25, %v624_v39  ;;  %v3012_v28 = vsel %vm996_vm4, %v3009_v38, %v3011_v23  ;;  %v7432_v25 = vld [vmem:[%s9346_s1 + $0x2e8] sm:$0xff]   ;;  %v801_v38 = vrot.slane %v799_v50, 2  ;;  %v8180_v39 = vsel %vm794_vm3, %v817_v56, %v8163_v4  ;;  %v8205_v56 = vld [vmem:[%s7776_s30 + $0x30] ss:$0 sps:$4 sm:$0x33]  }
  0x58   : > { %6505 = vmatprep.subr.bf16.mxu1 %v7427_v13  ;;  %6793 = vmatprep.subr.bf16.mxu0 %v7428_v21 }
  0x59   : > { %6495 = vmatprep.mubr.msk.bf16.mxu1 %vm370_vm0, %v623_v55  ;;  %6783 = vmatprep.mubr.msk.bf16.mxu0 %vm370_vm0, %v3010_v51  ;;  %v3015_v55 = vrot.slane %v7989_v30, 2  ;;  %v7434_v30 = vld [vmem:[%s9346_s1 + $0x2f0] sm:$0xff]  }
  0x5b   : > { %6506 = vmatpush3.bf16.msra.mxu1 %v7427_v13  ;;  %6794 = vmatpush3.bf16.msra.mxu0 %v7428_v21  ;;  %v628_v13 = vrot.slane %v7904_v10, 1  ;;  %v798_v21 = vrot.slane %v796_v5, 1  ;;  %v7433_v10 = vld [vmem:[%s9346_s1 + $0xb0] sm:$0xff]   ;;  %v3016_v2 = vsel %vm996_vm4, %v3013_v8, %v3015_v55  ;;  %v7435_v5 = vld [vmem:[%s9346_s1 + $0xb8] sm:$0xff]   ;;  %v3230_v55 = vrot.slane %v8228_v17, 2 }
  0x5c   : > { %6507 = vmatprep.subr.bf16.mxu1 %v7429_v16  ;;  %6795 = vmatprep.subr.bf16.mxu0 %v7430_v43 }
  0x5d   : > { %v802_v23 = vor.u32 %v801_v38, %v798_v21  ;;  %v629_v51 = vsel %vm616_vm1, %v626_v49, %v628_v13  ;;  %v7436_v49 = vld [vmem:[%s9346_s1 + $0x2f8] sm:$0xff]   ;;  %v7443_v21 = vld [vmem:[%s9346_s1 + $0x308] sm:$0xff]  }
  0x5e   : > { %6496 = vmatmul.mubr.msk.bf16.gmra.mrb[4].mxu1 %vm370_vm0, %v625_v20  ;;  %6784 = vmatmul.mubr.msk.bf16.gmra.mrb[4].mxu0 %vm370_vm0, %v3012_v28  ;;  %v3226_v20 = vrot.slane %v8192_v62, 2  ;;  %v7442_v28 = vld [vmem:[%s9346_s1 + $0xc8] sm:$0xff]   ;;  %v3175_v38 = vld [vmem:[%s7776_s30 + $0x3c] sm:$0xf] }
  0x5f   : > { %6508 = vmatpush3.bf16.msra.mxu1 %v7429_v16  ;;  %6796 = vmatpush3.bf16.msra.mxu0 %v7430_v43  ;;  %v3223_v16 = vrot.slane %v8172_v60, 2  ;;  %v3224_v43 = vrot.slane %v8176_v61, 2  ;;  %v806_v50 = vsel %vm794_vm3, %v802_v23, %v8065_v35  ;;  %v7441_v35 = vld [vmem:[%s9346_s1 + $0x300] sm:$0xff]   ;;  %v8249_v23 = vcombine.low %v8153_v34, %v3175_v38 }
  0x60   : > { %6509 = vmatprep.subr.bf16.mxu1 %v7431_v29  ;;  %6797 = vmatprep.subr.bf16.mxu0 %v7432_v25 }
  0x61   : > { %6499 = vmatprep.mubr.msk.bf16.mxu1 %vm370_vm0, %v627_v53  ;;  %6787 = vmatprep.mubr.msk.bf16.mxu0 %vm370_vm0, %v3014_v9  ;;  %v3225_v8 = vsel %vm996_vm4, %v3223_v16, %v3224_v43  ;;  %v3227_v13 = vsel %vm996_vm4, %v3224_v43, %v3226_v20  ;;  %v827_v53 = vshll.u32 %v8205_v56, 16  ;;  %v7445_v9 = vld [vmem:[%s9346_s1 + $0xd0] sm:$0xff]   ;;  %v979_v16 = vld [vmem:[%s7776_s30] sm:$0xc]  ;;  %v9361_v24 = vshrl.u32 %v8249_v23, 16 }
  0x62   : > { %v9360_v22 = vshll.u32 %v8249_v23, 16 }
  0x63   : > { %6510 = vmatpush3.bf16.msra.mxu1 %v7431_v29  ;;  %6798 = vmatpush3.bf16.msra.mxu0 %v7432_v25  ;;  %v3228_v29 = vrot.slane %v8215_v48, 2  ;;  %v824_v25 = vshrl.u32 %v8205_v56, 16  ;;  %v829_v43 = vrot.slane %v827_v53, 2  ;;  %v9367_v53 = vshrl.u32 %v8192_v62, 16 }
  0x64   : > { %6511 = vmatprep.subr.bf16.mxu1 %v7433_v10  ;;  %6799 = vmatprep.subr.bf16.mxu0 %v7434_v30 }
  0x66   : > { %6500 = vmatmul.mubr.msk.bf16.gmra.mrb[8].mxu1 %vm370_vm0, %v629_v51  ;;  %6788 = vmatmul.mubr.msk.bf16.gmra.mrb[8].mxu0 %vm370_vm0, %v3016_v2  ;;  %v826_v51 = vrot.slane %v824_v25, 1  ;;  %v3401_v2 = vshrl.u32 %v8172_v60, 16 }
  0x67   : > { %6512 = vmatpush3.bf16.msra.mxu1 %v7433_v10  ;;  %6800 = vmatpush3.bf16.msra.mxu0 %v7434_v30  ;;  %v3229_v10 = vsel %vm996_vm4, %v3226_v20, %v3228_v29  ;;  %v7447_v30 = vld [vmem:[%s9346_s1 + $0x310] sm:$0xff]  }
  0x68   : > { %6513 = vmatprep.subr.bf16.mxu1 %v7435_v5  ;;  %6801 = vmatprep.subr.bf16.mxu0 %v7436_v49  ;;  %v830_v20 = vor.u32 %v829_v43, %v826_v51 }
  0x69   : > { %6515 = vmatprep.mubr.msk.bf16.mxu1 %vm370_vm0, %v806_v50  ;;  %6803 = vmatprep.mubr.msk.bf16.mxu0 %vm370_vm0, %v3225_v8  ;;  %v3232_v50 = vrot.slane %v8249_v23, 2  ;;  %v3412_v8 = vshll.u32 %v8176_v61, 16 }
  0x6b   : > { %6514 = vmatpush3.bf16.msra.mxu1 %v7435_v5  ;;  %6802 = vmatpush3.bf16.msra.mxu0 %v7436_v49  ;;  %v3404_v5 = vshll.u32 %v8172_v60, 16  ;;  %v3409_v49 = vshrl.u32 %v8176_v61, 16  ;;  %v7449_v60 = vld [vmem:[%s9346_s1 + $0x318] sm:$0xff]   ;;  %v3414_v51 = vrot.slane %v3412_v8, 3 }
  0x6c   : > { %6527 = vmatprep.subr.bf16.mxu1 %v7439_v19  ;;  %6815 = vmatprep.subr.bf16.mxu0 %v7441_v35 }
  0x6d   : > { %v3411_v38 = vrot.slane %v3409_v49, 2 }
  0x6e   : > { %6516 = vmatmul.mubr.msk.bf16.vlgmr.msra.gmra.mrb[0].mxu1 %vm370_vm0, %v8090_v47  ;;  %6804 = vmatmul.mubr.msk.bf16.vlgmr.msra.gmra.mrb[0].mxu0 %vm370_vm0, %v3227_v13  ;;  %v8252_v47 = vld [vmem:[%s7776_s30 + $0x40] ss:$0 sps:$4 sm:$0x33]   ;;  %v3403_v13 = vrot.slane %v3401_v2, 2  ;;  %v8290_v2 = vld [vmem:[%s7776_s30 + $0x10] sm:$0xff]  }
  0x6f   : > { %6528 = vmatpush3.bf16.msra.mxu1 %v7439_v19  ;;  %6816 = vmatpush3.bf16.msra.mxu0 %v7441_v35  ;;  %v3231_v19 = vsel %vm996_vm4, %v3228_v29, %v3230_v55  ;;  %v3234_v35 = vrot.slane %v8252_v47, 2  ;;  %v7452_v29 = vld [vmem:[%s9346_s1 + $0xe0] sm:$0xff]   ;;  %v9366_v47 = vshll.u32 %v8192_v62, 16 }
  0x70   : > { %6529 = vmatprep.subr.bf16.mxu1 %v7442_v28  ;;  %6817 = vmatprep.subr.bf16.mxu0 %v7443_v21 }
  0x71   : > { %6519 = vmatprep.mubr.msk.bf16.mxu1 %vm370_vm0, %v8134_v15  ;;  %6807 = vmatprep.mubr.msk.bf16.mxu0 %vm370_vm0, %v3229_v10  ;;  %v7448_v15 = vld [vmem:[%s9346_s1 + $0xd8] sm:$0xff]   ;;  %v3233_v10 = vsel %vm996_vm4, %v3230_v55, %v3232_v50  ;;  %v9365_v55 = vshrl.u32 %v8215_v48, 16 }
  0x73   : > { %6530 = vmatpush3.bf16.msra.mxu1 %v7442_v28  ;;  %6818 = vmatpush3.bf16.msra.mxu0 %v7443_v21  ;;  %v7596_v28 = vld [vmem:[%s7776_s30 + $0x4] sm:$0xf]  ;;  %v3406_v21 = vrot.slane %v3404_v5, 3  ;;  %v1000_v5 = vrot.slane %v8290_v2, 2  ;;  %v3450_v2 = vrot.slane %v9360_v22, 3 }
  0x74   : > { %6531 = vmatprep.subr.bf16.mxu1 %v7445_v9  ;;  %6819 = vmatprep.subr.bf16.mxu0 %v7447_v30  ;;  %v5546_v25 = vcombine.low %v979_v16, %v7596_v28  ;;  %v7597_v16 = vld [vmem:[%s7776_s30 + $0x8] sm:$0xff]   ;;  %v9364_v28 = vshll.u32 %v8215_v48, 16 }
  0x75   : > { %v998_v43 = vrot.slane %v7597_v16, 2  ;;  %v9363_v16 = vshrl.u32 %v8228_v17, 16 }
  0x76   : > { %6520 = vmatmul.mubr.msk.bf16.gmra.mrb[4].mxu1 %vm370_vm0, %v8141_v27  ;;  %6808 = vmatmul.mubr.msk.bf16.gmra.mrb[4].mxu0 %vm370_vm0, %v3231_v19  ;;  %v7454_v27 = vld [vmem:[%s9346_s1 + $0x320] sm:$0xff]   ;;  %v7455_v19 = vld [vmem:[%s9346_s1 + $0xe8] sm:$0xff]   ;;  %v3432_v59 = vrot.slane %v9364_v28, 3 }
  0x77   : > { %6532 = vmatpush3.bf16.msra.mxu1 %v7445_v9  ;;  %6820 = vmatpush3.bf16.msra.mxu0 %v7447_v30  ;;  %v997_v9 = vrot.slane %v5546_v25, 2  ;;  %v831_v30 = vsel %vm794_vm3, %v8163_v4, %v830_v20  ;;  %v3407_v25 = vor.u32 %v3406_v21, %v3403_v13  ;;  %v3420_v4 = vrot.slane %v9367_v53, 2  ;;  %v8327_v21 = vld [vmem:[%s7776_s30 + $0x18] sm:$0xff]  }
  0x78   : > { %6533 = vmatprep.subr.bf16.mxu1 %v7448_v15  ;;  %6821 = vmatprep.subr.bf16.mxu0 %v7449_v60  ;;  %v3423_v20 = vrot.slane %v9366_v47, 3  ;;  %v3438_v58 = vrot.slane %v9363_v16, 2  ;;  %v3441_v13 = vrot.slane %v9362_v45, 3 }
  0x79   : > { %6523 = vmatprep.mubr.msk.bf16.mxu1 %vm370_vm0, %v8180_v39  ;;  %6811 = vmatprep.mubr.msk.bf16.mxu0 %vm370_vm0, %v3233_v10  ;;  %v7456_v39 = vld [vmem:[%s9346_s1 + $0x328] sm:$0xff]   ;;  %v3415_v10 = vor.u32 %v3414_v51, %v3411_v38  ;;  %v1002_v38 = vrot.slane %v8327_v21, 2  ;;  %v3429_v51 = vrot.slane %v9365_v55, 2 }
  0x7a   : > { %v3424_v44 = vor.u32 %v3423_v20, %v3420_v4  ;;  %v8369_v20 = vld [vmem:[%s7776_s30 + $0x24] sm:$0xf]  ;;  %v7465_v21 = vld [vmem:[%s9346_s1 + $0x348] sm:$0xff]  }
  0x7b   : > { %6534 = vmatpush3.bf16.msra.mxu1 %v7448_v15  ;;  %6822 = vmatpush3.bf16.msra.mxu0 %v7449_v60  ;;  %v3235_v15 = vsel %vm996_vm4, %v3232_v50, %v3234_v35  ;;  %v999_v50 = vsel %vm996_vm4, %v997_v9, %v998_v43  ;;  %v7458_v35 = vld [vmem:[%s9346_s1 + $0xf0] sm:$0xff]   ;;  %v8352_v60 = vld [vmem:[%s7776_s30 + $0x40] ss:$0 sps:$4 sm:$0x77]   ;;  %v3433_v4 = vor.u32 %v3432_v59, %v3429_v51 }
  0x7c   : > { %6535 = vmatprep.subr.bf16.mxu1 %v7452_v29  ;;  %6823 = vmatprep.subr.bf16.mxu0 %v7454_v27  ;;  %v7459_v9 = vld [vmem:[%s9346_s1 + $0x330] sm:$0xff]   ;;  %v3457_v51 = vshll.u32 %v8352_v60, 16  ;;  %v3637_v45 = vrot.slane %v8352_v60, 3 }
  0x7d   : > { %v3434_v59 = vsel %vm1393_vm5, %v3424_v44, %v3433_v4 }
  0x7e   : > { %6524 = vmatmul.mubr.msk.bf16.gmra.mrb[8].mxu1 %vm370_vm0, %v831_v30  ;;  %6812 = vmatmul.mubr.msk.bf16.gmra.mrb[8].mxu0 %vm370_vm0, %v3235_v15  ;;  %v3416_v30 = vsel %vm1393_vm5, %v3407_v25, %v3415_v10  ;;  %v8360_v25 = vld [vmem:[%s7776_s30 + $0x1c] sm:$0xf]  ;;  %v8363_v15 = vld [vmem:[%s7776_s30 + $0x20] sm:$0xf]  ;;  %v3459_v41 = vrot.slane %v3457_v51, 3 }
  0x7f   : > { %6536 = vmatpush3.bf16.msra.mxu1 %v7452_v29  ;;  %6824 = vmatpush3.bf16.msra.mxu0 %v7454_v27  ;;  %v8356_v29 = vld [vmem:[%s7776_s30 + $0x18] sm:$0xf]  ;;  %v1001_v27 = vsel %vm996_vm4, %v998_v43, %v1000_v5 }
  0x80   : > { %6537 = vmatprep.subr.bf16.mxu1 %v7455_v19  ;;  %6825 = vmatprep.subr.bf16.mxu0 %v7456_v39  ;;  %v7461_v43 = vld [vmem:[%s9346_s1 + $0x338] sm:$0xff]  }
  0x81   : > { %6539 = vmatprep.mubr.msk.bf16.mxu1 %vm370_vm0, %v999_v50  ;;  %6827 = vmatprep.mubr.msk.bf16.mxu0 %vm370_vm0, %v3416_v30  ;;  %v3425_v50 = vsel %vm1393_vm5, %v3415_v10, %v3424_v44  ;;  %v7460_v30 = vld [vmem:[%s9346_s1 + $0xf8] sm:$0xff]   ;;  %v3454_v10 = vshrl.u32 %v8352_v60, 16  ;;  %v7463_v44 = vld [vmem:[%s9346_s1 + $0x340] sm:$0xff]  }
  0x83   : > { %6538 = vmatpush3.bf16.msra.mxu1 %v7455_v19  ;;  %6826 = vmatpush3.bf16.msra.mxu0 %v7456_v39  ;;  %v1003_v39 = vsel %vm996_vm4, %v1000_v5, %v1002_v38  ;;  %v7600_v19 = vld [vmem:[%s7776_s30 + $0x20] sm:$0xff]   ;;  %v3456_v1 = vrot.slane %v3454_v10, 2  ;;  %v1008_v10 = vrot.slane %v8205_v56, 2 }
  0x84   : > { %6551 = vmatprep.subr.bf16.mxu1 %v7458_v35  ;;  %6839 = vmatprep.subr.bf16.mxu0 %v7459_v9  ;;  %v1004_v42 = vrot.slane %v7600_v19, 2  ;;  %v7462_v5 = vld [vmem:[%s9346_s1 + $0x100] sm:$0xff]  }
  0x86   : > { %6540 = vmatmul.mubr.msk.bf16.vlgmr.msra.gmra.mrb[0].mxu1 %vm370_vm0, %v1001_v27  ;;  %6828 = vmatmul.mubr.msk.bf16.vlgmr.msra.gmra.mrb[0].mxu0 %vm370_vm0, %v3425_v50  ;;  %v3447_v27 = vrot.slane %v9361_v24, 2  ;;  %v3442_v50 = vor.u32 %v3441_v13, %v3438_v58  ;;  %v1005_v58 = vsel %vm996_vm4, %v1002_v38, %v1004_v42  ;;  %v7481_v24 = vld [vmem:[%s9346_s1 + $0x130] sm:$0xff]  }
  0x87   : > { %6552 = vmatpush3.bf16.msra.mxu1 %v7458_v35  ;;  %6840 = vmatpush3.bf16.msra.mxu0 %v7459_v9  ;;  %v7601_v35 = vld [vmem:[%s7776_s30 + $0x28] sm:$0xff]  }
  0x88   : > { %6553 = vmatprep.subr.bf16.mxu1 %v7460_v30  ;;  %6841 = vmatprep.subr.bf16.mxu0 %v7461_v43  ;;  %v1006_v19 = vrot.slane %v7601_v35, 2  ;;  %v7464_v9 = vld [vmem:[%s9346_s1 + $0x108] sm:$0xff]   ;;  %v3451_v13 = vor.u32 %v3450_v2, %v3447_v27  ;;  %v3609_v35 = vld [vmem:[%s7776_s30 + $0x10] sm:$0x8] }
  0x89   : > { %6543 = vmatprep.mubr.msk.bf16.mxu1 %vm370_vm0, %v1003_v39  ;;  %6831 = vmatprep.mubr.msk.bf16.mxu0 %vm370_vm0, %v3434_v59  ;;  %v8416_v39 = vld [vmem:[%s7776_s30 + $0x28] sm:$0xf]  ;;  %v3443_v59 = vsel %vm1393_vm5, %v3433_v4, %v3442_v50  ;;  %v8441_v51 = vcombine.low %v3609_v35, %v8058_v31  ;;  %v7468_v27 = vld [vmem:[%s9346_s1 + $0x350] sm:$0xff]  }
  0x8a   : > { %v1007_v38 = vsel %vm996_vm4, %v1004_v42, %v1006_v19  ;;  %v3452_v4 = vsel %vm1393_vm5, %v3442_v50, %v3451_v13  ;;  %v3460_v42 = vor.u32 %v3459_v41, %v3456_v1  ;;  %v3627_v41 = vrot.slane %v8176_v61, 3 }
  0x8b   : > { %6554 = vmatpush3.bf16.msra.mxu1 %v7460_v30  ;;  %6842 = vmatpush3.bf16.msra.mxu0 %v7461_v43  ;;  %v8431_v30 = vcombine.low %v1157_v7, %v8312_v26  ;;  %v8435_v43 = vcombine.low %v8315_v18, %v8319_v0  ;;  %v7466_v7 = vld [vmem:[%s9346_s1 + $0x110] sm:$0xff]   ;;  %v3626_v50 = vrot.slane %v8441_v51, 3  ;;  %v8458_v1 = vcombine.low %v8322_v63, %v8356_v29 }
  0x8c   : > { %6555 = vmatprep.subr.bf16.mxu1 %v7462_v5  ;;  %6843 = vmatprep.subr.bf16.mxu0 %v7463_v44  ;;  %v3807_v28 = vshll.u32 %v8441_v51, 16 }
  0x8d   : > { %v1216_v56 = vrot.slane %v8431_v30, 2  ;;  %v1217_v2 = vrot.slane %v8435_v43, 2  ;;  %v1219_v35 = vrot.slane %v8458_v1, 2  ;;  %v1406_v60 = vshll.u32 %v8435_v43, 16 }
  0x8e   : > { %6544 = vmatmul.mubr.msk.bf16.gmra.mrb[4].mxu1 %vm370_vm0, %v1005_v58  ;;  %6832 = vmatmul.mubr.msk.bf16.gmra.mrb[4].mxu0 %vm370_vm0, %v3443_v59  ;;  %v7469_v58 = vld [vmem:[%s9346_s1 + $0x118] sm:$0xff]   ;;  %v8471_v59 = vcombine.low %v8360_v25, %v8363_v15 }
  0x8f   : > { %6556 = vmatpush3.bf16.msra.mxu1 %v7462_v5  ;;  %6844 = vmatpush3.bf16.msra.mxu0 %v7463_v44  ;;  %v1009_v5 = vsel %vm996_vm4, %v1006_v19, %v1008_v10  ;;  %v3461_v44 = vsel %vm1393_vm5, %v3451_v13, %v3460_v42  ;;  %v7470_v19 = vld [vmem:[%s9346_s1 + $0x358] sm:$0xff]   ;;  %v3628_v13 = vsel %vm1620_vm6, %v3626_v50, %v3627_v41  ;;  %v7477_v10 = vld [vmem:[%s9346_s1 + $0x128] sm:$0xff]   ;;  %v3631_v42 = vrot.slane %v8215_v48, 3 }
  0x90   : > { %6557 = vmatprep.subr.bf16.mxu1 %v7464_v9  ;;  %6845 = vmatprep.subr.bf16.mxu0 %v7465_v21  ;;  %v8497_v50 = vcombine.low %v8369_v20, %v8416_v39 }
  0x91   : > { %6547 = vmatprep.mubr.msk.bf16.mxu1 %vm370_vm0, %v1007_v38  ;;  %6835 = vmatprep.mubr.msk.bf16.mxu0 %vm370_vm0, %v3452_v4  ;;  %v3629_v38 = vrot.slane %v8192_v62, 3  ;;  %v7476_v4 = vld [vmem:[%s9346_s1 + $0x360] sm:$0xff]  }
  0x93   : > { %6558 = vmatpush3.bf16.msra.mxu1 %v7464_v9  ;;  %6846 = vmatpush3.bf16.msra.mxu0 %v7465_v21  ;;  %v1218_v9 = vsel %vm996_vm4, %v1216_v56, %v1217_v2  ;;  %v7475_v21 = vld [vmem:[%s9346_s1 + $0x120] sm:$0xff]   ;;  %v1220_v56 = vsel %vm996_vm4, %v1217_v2, %v1219_v35  ;;  %v3635_v2 = vrot.slane %v8249_v23, 3 }
  0x94   : > { %6559 = vmatprep.subr.bf16.mxu1 %v7466_v7  ;;  %6847 = vmatprep.subr.bf16.mxu0 %v7468_v27 }
  0x96   : > { %6548 = vmatmul.mubr.msk.bf16.gmra.mrb[8].mxu1 %vm370_vm0, %v1009_v5  ;;  %6836 = vmatmul.mubr.msk.bf16.gmra.mrb[8].mxu0 %vm370_vm0, %v3461_v44  ;;  %v7478_v5 = vld [vmem:[%s9346_s1 + $0x368] sm:$0xff]   ;;  %v3633_v44 = vrot.slane %v8228_v17, 3 }
  0x97   : > { %6560 = vmatpush3.bf16.msra.mxu1 %v7466_v7  ;;  %6848 = vmatpush3.bf16.msra.mxu0 %v7468_v27  ;;  %v1221_v7 = vrot.slane %v8471_v59, 2  ;;  %v1168_v27 = vld [vmem:[%s7776_s30 + $0x30] sm:$0xf] }
  0x98   : > { %6561 = vmatprep.subr.bf16.mxu1 %v7469_v58  ;;  %6849 = vmatprep.subr.bf16.mxu0 %v7470_v19  ;;  %v3636_v61 = vsel %vm1620_vm6, %v3633_v44, %v3635_v2 }
  0x99   : > { %6563 = vmatprep.mubr.msk.bf16.mxu1 %vm370_vm0, %v1218_v9  ;;  %6851 = vmatprep.mubr.msk.bf16.mxu0 %vm370_vm0, %v3628_v13  ;;  %v3630_v9 = vsel %vm1620_vm6, %v3627_v41, %v3629_v38  ;;  %v8502_v13 = vcombine.low %v8419_v40, %v1168_v27  ;;  %v1222_v22 = vsel %vm996_vm4, %v1219_v35, %v1221_v7  ;;  %v7482_v27 = vld [vmem:[%s9346_s1 + $0x370] sm:$0xff]   ;;  %v1395_v35 = vshrl.u32 %v8431_v30, 16 }
  0x9a   : > { %v3632_v41 = vsel %vm1620_vm6, %v3629_v38, %v3631_v42  ;;  %v1403_v38 = vshrl.u32 %v8435_v43, 16 }
  0x9b   : > { %6562 = vmatpush3.bf16.msra.mxu1 %v7469_v58  ;;  %6850 = vmatpush3.bf16.msra.mxu0 %v7470_v19  ;;  %v7486_v58 = vld [vmem:[%s7776_s30 + $0x34] ss:$0 sps:$4 sm:$0x33]   ;;  %v1223_v19 = vrot.slane %v8497_v50, 2  ;;  %v1397_v55 = vrot.slane %v1395_v35, 2 }
  0x9c   : > { %6575 = vmatprep.subr.bf16.mxu1 %v7475_v21  ;;  %6863 = vmatprep.subr.bf16.mxu0 %v7476_v4  ;;  %v1227_v16 = vrot.slane %v7486_v58, 2  ;;  %v1405_v53 = vrot.slane %v1403_v38, 2  ;;  %v9368_v58 = vshrl.u32 %v8458_v1, 16 }
  0x9e   : > { %6564 = vmatmul.mubr.msk.bf16.vlgmr.msra.gmra.mrb[0].mxu1 %vm370_vm0, %v1220_v56  ;;  %6852 = vmatmul.mubr.msk.bf16.vlgmr.msra.gmra.mrb[0].mxu0 %vm370_vm0, %v3630_v9  ;;  %v1398_v56 = vshll.u32 %v8431_v30, 16  ;;  %v7483_v9 = vld [vmem:[%s9346_s1 + $0x138] sm:$0xff]   ;;  %v1224_v30 = vsel %vm996_vm4, %v1221_v7, %v1223_v19  ;;  %v3812_v7 = vrot.slane %v3412_v8, 4  ;;  %v3809_v8 = vrot.slane %v3807_v28, 4  ;;  %v7489_v28 = vld [vmem:[%s9346_s1 + $0x148] sm:$0xff]  }
  0x9f   : > { %6576 = vmatpush3.bf16.msra.mxu1 %v7475_v21  ;;  %6864 = vmatpush3.bf16.msra.mxu0 %v7476_v4  ;;  %v1225_v21 = vrot.slane %v8502_v13, 2  ;;  %v3804_v4 = vshrl.u32 %v8441_v51, 16 }
  0xa0   : > { %6577 = vmatprep.subr.bf16.mxu1 %v7477_v10  ;;  %6865 = vmatprep.subr.bf16.mxu0 %v7478_v5  ;;  %v1400_v47 = vrot.slane %v1398_v56, 3 }
  0xa1   : > { %6567 = vmatprep.mubr.msk.bf16.mxu1 %vm370_vm0, %v1222_v22  ;;  %6855 = vmatprep.mubr.msk.bf16.mxu0 %vm370_vm0, %v3632_v41  ;;  %v7484_v22 = vld [vmem:[%s9346_s1 + $0x378] sm:$0xff]   ;;  %v3634_v41 = vsel %vm1620_vm6, %v3631_v42, %v3633_v44  ;;  %v1226_v51 = vsel %vm996_vm4, %v1223_v19, %v1225_v21  ;;  %v7487_v42 = vld [vmem:[%s9346_s1 + $0x140] sm:$0xff]   ;;  %v3806_v35 = vrot.slane %v3804_v4, 3  ;;  %v1415_v19 = vshll.u32 %v8458_v1, 16 }
  0xa2   : > { %v1228_v56 = vsel %vm996_vm4, %v1225_v21, %v1227_v16  ;;  %v9375_v44 = vshrl.u32 %v8192_v62, 16  ;;  %v7490_v16 = vld [vmem:[%s9346_s1 + $0x388] sm:$0xff]  }
  0xa3   : > { %6578 = vmatpush3.bf16.msra.mxu1 %v7477_v10  ;;  %6866 = vmatpush3.bf16.msra.mxu0 %v7478_v5  ;;  %v3811_v10 = vrot.slane %v3409_v49, 3  ;;  %v1408_v5 = vrot.slane %v1406_v60, 3  ;;  %v7488_v49 = vld [vmem:[%s9346_s1 + $0x380] sm:$0xff]   ;;  %v3810_v21 = vor.u32 %v3809_v8, %v3806_v35 }
  0xa4   : > { %6579 = vmatprep.subr.bf16.mxu1 %v7481_v24  ;;  %6867 = vmatprep.subr.bf16.mxu0 %v7482_v27  ;;  %v3815_v4 = vrot.slane %v9375_v44, 3  ;;  %v9372_v44 = vshrl.u32 %v8497_v50, 16 }
  0xa6   : > { %6568 = vmatmul.mubr.msk.bf16.gmra.mrb[4].mxu1 %vm370_vm0, %v1224_v30  ;;  %6856 = vmatmul.mubr.msk.bf16.gmra.mrb[4].mxu0 %vm370_vm0, %v3634_v41  ;;  %v1409_v30 = vor.u32 %v1408_v5, %v1405_v53  ;;  %v1421_v41 = vshrl.u32 %v8471_v59, 16  ;;  %v3638_v53 = vsel %vm1620_vm6, %v3635_v2, %v3637_v45  ;;  %v9377_v5 = vshrl.u32 %v8215_v48, 16  ;;  %v7491_v45 = vld [vmem:[%s9346_s1 + $0x150] sm:$0xff]  }
  0xa7   : > { %6580 = vmatpush3.bf16.msra.mxu1 %v7481_v24  ;;  %6868 = vmatpush3.bf16.msra.mxu0 %v7482_v27  ;;  %v1414_v24 = vrot.slane %v9368_v58, 2  ;;  %v1401_v27 = vor.u32 %v1400_v47, %v1397_v55  ;;  %v3813_v58 = vor.u32 %v3812_v7, %v3811_v10  ;;  %v9376_v47 = vshll.u32 %v8192_v62, 16 }
  0xa8   : > { %6581 = vmatprep.subr.bf16.mxu1 %v7483_v9  ;;  %6869 = vmatprep.subr.bf16.mxu0 %v7484_v22  ;;  %v3819_v10 = vrot.slane %v9377_v5, 3  ;;  %v9378_v7 = vshll.u32 %v8215_v48, 16  ;;  %v1423_v62 = vrot.slane %v1421_v41, 2 }
  0xa9   : > { %6571 = vmatprep.mubr.msk.bf16.mxu1 %vm370_vm0, %v1226_v51  ;;  %6859 = vmatprep.mubr.msk.bf16.mxu0 %vm370_vm0, %v3636_v61  ;;  %v1424_v51 = vshll.u32 %v8471_v59, 16  ;;  %v1417_v61 = vrot.slane %v1415_v19, 3  ;;  %v3816_v55 = vrot.slane %v9376_v47, 4  ;;  %v3814_v48 = vsel %vm1798_vm7, %v3810_v21, %v3813_v58 }
  0xaa   : > { %v3820_v35 = vrot.slane %v9378_v7, 4  ;;  %v8611_v7 = vld [vmem:[%s7776_s30 + $0x34] ss:$0 sps:$4 sm:$0x77]  }
  0xab   : > { %6582 = vmatpush3.bf16.msra.mxu1 %v7483_v9  ;;  %6870 = vmatpush3.bf16.msra.mxu0 %v7484_v22  ;;  %v9369_v9 = vshll.u32 %v8497_v50, 16  ;;  %v1410_v22 = vsel %vm1393_vm5, %v1401_v27, %v1409_v30  ;;  %v1426_v2 = vrot.slane %v1424_v51, 3  ;;  %v1418_v8 = vor.u32 %v1417_v61, %v1414_v24  ;;  %v8606_v24 = vld [vmem:[%s7776_s30 + $0x40] sm:$0xf] }
  0xac   : > { %6583 = vmatprep.subr.bf16.mxu1 %v7487_v42  ;;  %6871 = vmatprep.subr.bf16.mxu0 %v7488_v49  ;;  %v1432_v27 = vrot.slane %v9372_v44, 2  ;;  %v3817_v47 = vor.u32 %v3816_v55, %v3815_v4  ;;  %v9370_v61 = vshll.u32 %v8502_v13, 16  ;;  %v7493_v4 = vld [vmem:[%s9346_s1 + $0x158] sm:$0xff]  }
  0xad   : > { %v1435_v5 = vrot.slane %v9369_v9, 3  ;;  %v1427_v21 = vor.u32 %v1426_v2, %v1423_v62  ;;  %v5924_v2 = vcombine.low %v8606_v24, %v8606_v24  ;;  %v9382_v9 = vshll.u32 %v8249_v23, 16 }
  0xae   : > { %6572 = vmatmul.mubr.msk.bf16.gmra.mrb[8].mxu1 %vm370_vm0, %v1228_v56  ;;  %6860 = vmatmul.mubr.msk.bf16.gmra.mrb[8].mxu0 %vm370_vm0, %v3638_v53  ;;  %v7492_v56 = vld [vmem:[%s9346_s1 + $0x390] sm:$0xff]   ;;  %v9371_v53 = vshrl.u32 %v8502_v13, 16  ;;  %v3818_v55 = vsel %vm1798_vm7, %v3813_v58, %v3817_v47 }
  0xaf   : > { %6584 = vmatpush3.bf16.msra.mxu1 %v7487_v42  ;;  %6872 = vmatpush3.bf16.msra.mxu0 %v7488_v49  ;;  %v3821_v42 = vor.u32 %v3820_v35, %v3819_v10  ;;  %v1419_v49 = vsel %vm1393_vm5, %v1409_v30, %v1418_v8  ;;  %v9379_v10 = vshrl.u32 %v8228_v17, 16  ;;  %v1428_v58 = vsel %vm1393_vm5, %v1418_v8, %v1427_v21 }
  0xb0   : > { %6585 = vmatprep.subr.bf16.mxu1 %v7489_v28  ;;  %6873 = vmatprep.subr.bf16.mxu0 %v7490_v16  ;;  %v1451_v8 = vshll.u32 %v8611_v7, 16 }
  0xb1   : > { %6587 = vmatprep.mubr.msk.bf16.mxu1 %vm370_vm0, %v1410_v22  ;;  %6875 = vmatprep.mubr.msk.bf16.mxu0 %vm370_vm0, %v3814_v48  ;;  %v3823_v35 = vrot.slane %v9379_v10, 3  ;;  %v9380_v22 = vshll.u32 %v8228_v17, 16  ;;  %v3822_v30 = vsel %vm1798_vm7, %v3817_v47, %v3821_v42  ;;  %v1441_v48 = vrot.slane %v9371_v53, 2 }
  0xb2   : > { %v1444_v17 = vrot.slane %v9370_v61, 3  ;;  %v9381_v10 = vshrl.u32 %v8249_v23, 16  ;;  %v3828_v47 = vrot.slane %v9382_v9, 4  ;;  %v7496_v23 = vld [vmem:[%s9346_s1 + $0x3a0] sm:$0xff]   ;;  %v7497_v9 = vld [vmem:[%s9346_s1 + $0x168] sm:$0xff]  }
  0xb3   : > { %6586 = vmatpush3.bf16.msra.mxu1 %v7489_v28  ;;  %6874 = vmatpush3.bf16.msra.mxu0 %v7490_v16  ;;  %v3824_v62 = vrot.slane %v9380_v22, 4  ;;  %v7494_v28 = vld [vmem:[%s9346_s1 + $0x398] sm:$0xff]   ;;  %v1436_v16 = vor.u32 %v1435_v5, %v1432_v27  ;;  %v7495_v27 = vld [vmem:[%s9346_s1 + $0x160] sm:$0xff]  }
  0xb4   : > { %6599 = vmatprep.subr.bf16.mxu1 %v7491_v45  ;;  %6887 = vmatprep.subr.bf16.mxu0 %v7492_v56  ;;  %v3827_v22 = vrot.slane %v9381_v10, 3  ;;  %v1603_v61 = vld [vmem:[%s7776_s30 + $0x4] sm:$0x8] }
  0xb5   : > { %v3825_v5 = vor.u32 %v3824_v62, %v3823_v35  ;;  %v1437_v10 = vsel %vm1393_vm5, %v1427_v21, %v1436_v16  ;;  %v8661_v21 = vcombine.low %v1603_v61, %v8312_v26  ;;  %v7502_v61 = vld [vmem:[%s9346_s1 + $0x3b0] sm:$0xff]  }
  0xb6   : > { %6588 = vmatmul.mubr.msk.bf16.vlgmr.msra.gmra.mrb[0].mxu1 %vm370_vm0, %v1419_v49  ;;  %6876 = vmatmul.mubr.msk.bf16.vlgmr.msra.gmra.mrb[0].mxu0 %vm370_vm0, %v3818_v55  ;;  %v1448_v49 = vshrl.u32 %v8611_v7, 16  ;;  %v3832_v55 = vshrl.u32 %v5924_v2, 16  ;;  %v3829_v35 = vor.u32 %v3828_v47, %v3827_v22  ;;  %v1622_v22 = vrot.slane %v8435_v43, 3  ;;  %v7522_v43 = vld [vmem:[%s9346_s1 + $0x1a8] sm:$0xff]  }
  0xb7   : > { %6600 = vmatpush3.bf16.msra.mxu1 %v7491_v45  ;;  %6888 = vmatpush3.bf16.msra.mxu0 %v7492_v56  ;;  %v3835_v45 = vshll.u32 %v5924_v2, 16  ;;  %v1445_v56 = vor.u32 %v1444_v17, %v1441_v48  ;;  %v1453_v2 = vrot.slane %v1451_v8, 3  ;;  %v7500_v48 = vld [vmem:[%s9346_s1 + $0x170] sm:$0xff]  }
  0xb8   : > { %6601 = vmatprep.subr.bf16.mxu1 %v7493_v4  ;;  %6889 = vmatprep.subr.bf16.mxu0 %v7494_v28  ;;  %v1450_v62 = vrot.slane %v1448_v49, 2  ;;  %v3834_v53 = vrot.slane %v3832_v55, 3  ;;  %v7504_v49 = vld [vmem:[%s9346_s1 + $0x3b8] sm:$0xff]   ;;  %v7509_v55 = vld [vmem:[%s9346_s1 + $0x3c0] sm:$0xff]  }
  0xb9   : > { %6591 = vmatprep.mubr.msk.bf16.mxu1 %vm370_vm0, %v1428_v58  ;;  %6879 = vmatprep.mubr.msk.bf16.mxu0 %vm370_vm0, %v3822_v30  ;;  %v3826_v58 = vsel %vm1798_vm7, %v3821_v42, %v3825_v5  ;;  %v3837_v44 = vrot.slane %v3835_v45, 4  ;;  %v7498_v30 = vld [vmem:[%s9346_s1 + $0x3a8] sm:$0xff]   ;;  %v9383_v45 = vcombine.low %v8058_v31, %v8061_v33  ;;  %v9384_v33 = vcombine.low %v8068_v36, %v8071_v37 }
  0xba   : > { %v1454_v42 = vor.u32 %v1453_v2, %v1450_v62  ;;  %v7513_v62 = vld [vmem:[%s9346_s1 + $0x190] sm:$0xff]   ;;  %v1800_v36 = vshrl.u32 %v8661_v21, 16  ;;  %v1803_v37 = vshll.u32 %v8661_v21, 16 }
  0xbb   : > { %6602 = vmatpush3.bf16.msra.mxu1 %v7493_v4  ;;  %6890 = vmatpush3.bf16.msra.mxu0 %v7494_v28  ;;  %v1446_v4 = vsel %vm1393_vm5, %v1436_v16, %v1445_v56  ;;  %v3830_v28 = vsel %vm1798_vm7, %v3825_v5, %v3829_v35  ;;  %v3838_v17 = vor.u32 %v3837_v44, %v3834_v53  ;;  %v1621_v16 = vrot.slane %v8661_v21, 3  ;;  %v7503_v53 = vld [vmem:[%s9346_s1 + $0x178] sm:$0xff]   ;;  %v7507_v5 = vld [vmem:[%s9346_s1 + $0x180] sm:$0xff]   ;;  %v7515_v2 = vld [vmem:[%s9346_s1 + $0x3d0] sm:$0xff]  }
  0xbc   : > { %6603 = vmatprep.subr.bf16.mxu1 %v7495_v27  ;;  %6891 = vmatprep.subr.bf16.mxu0 %v7496_v23  ;;  %v1455_v47 = vsel %vm1393_vm5, %v1445_v56, %v1454_v42  ;;  %v7510_v56 = vld [vmem:[%s9346_s1 + $0x188] sm:$0xff]   ;;  %v7517_v21 = vld [vmem:[%s9346_s1 + $0x3d8] sm:$0xff]   ;;  %v1802_v42 = vrot.slane %v1800_v36, 3 }
  0xbd   : > { %v3839_v44 = vsel %vm1798_vm7, %v3829_v35, %v3838_v17  ;;  %v1623_v8 = vsel %vm1620_vm6, %v1621_v16, %v1622_v22  ;;  %v1628_v35 = vrot.slane %v8497_v50, 3  ;;  %v1808_v17 = vrot.slane %v1406_v60, 4  ;;  %v8807_v36 = vld [vmem:[%s7776_s30 + $0x1c] sm:$0xf] }
  0xbe   : > { %6592 = vmatmul.mubr.msk.bf16.gmra.mrb[4].mxu1 %vm370_vm0, %v1437_v10  ;;  %6880 = vmatmul.mubr.msk.bf16.gmra.mrb[4].mxu0 %vm370_vm0, %v3826_v58  ;;  %v7511_v10 = vld [vmem:[%s9346_s1 + $0x3c8] sm:$0xff]   ;;  %v9385_v58 = vcombine.low %v8097_v57, %v8102_v11  ;;  %v1805_v57 = vrot.slane %v1803_v37, 4  ;;  %v1632_v16 = vrot.slane %v8611_v7, 3 }
  0xbf   : > { %6604 = vmatpush3.bf16.msra.mxu1 %v7495_v27  ;;  %6892 = vmatpush3.bf16.msra.mxu0 %v7496_v23  ;;  %v1624_v27 = vrot.slane %v8458_v1, 3  ;;  %v1626_v23 = vrot.slane %v8471_v59, 3  ;;  %v7527_v59 = vld [vmem:[%s9346_s1 + $0x3f0] sm:$0xff]  }
  0xc0   : > { %6605 = vmatprep.subr.bf16.mxu1 %v7497_v9  ;;  %6893 = vmatprep.subr.bf16.mxu0 %v7498_v30 }
  0xc1   : > { %6595 = vmatprep.mubr.msk.bf16.mxu1 %vm370_vm0, %v1446_v4  ;;  %6883 = vmatprep.mubr.msk.bf16.mxu0 %vm370_vm0, %v3830_v28  ;;  %v1627_v31 = vsel %vm1620_vm6, %v1624_v27, %v1626_v23  ;;  %v1629_v4 = vsel %vm1620_vm6, %v1626_v23, %v1628_v35  ;;  %v7516_v28 = vld [vmem:[%s9346_s1 + $0x198] sm:$0xff]   ;;  %v7526_v23 = vld [vmem:[%s7776_s30 + $0x20] sm:$0xff]  }
  0xc3   : > { %6606 = vmatpush3.bf16.msra.mxu1 %v7497_v9  ;;  %6894 = vmatpush3.bf16.msra.mxu0 %v7498_v30  ;;  %v1625_v9 = vsel %vm1620_vm6, %v1622_v22, %v1624_v27  ;;  %v1630_v30 = vrot.slane %v8502_v13, 3  ;;  %v7519_v22 = vld [vmem:[%s9346_s1 + $0x1a0] sm:$0xff]   ;;  %v1815_v27 = vrot.slane %v1421_v41, 3  ;;  %v8787_v41 = vld [vmem:[%s7776_s30 + $0x34] sm:$0xf] }
  0xc4   : > { %6607 = vmatprep.subr.bf16.mxu1 %v7500_v48  ;;  %6895 = vmatprep.subr.bf16.mxu0 %v7502_v61 }
  0xc5   : > { %v1631_v11 = vsel %vm1620_vm6, %v1628_v35, %v1630_v30  ;;  %v1633_v7 = vsel %vm1620_vm6, %v1630_v30, %v1632_v16  ;;  %v7528_v35 = vld [vmem:[%s9346_s1 + $0x1b8] sm:$0xff]   ;;  %v8815_v30 = vld [vmem:[%s7776_s30 + $0x30] sm:$0xff]   ;;  %v9392_v16 = vshll.u32 %v8502_v13, 16 }
  0xc6   : > { %6596 = vmatmul.mubr.msk.bf16.gmra.mrb[8].mxu1 %vm370_vm0, %v1455_v47  ;;  %6884 = vmatmul.mubr.msk.bf16.gmra.mrb[8].mxu0 %vm370_vm0, %v3839_v44  ;;  %v7602_v47 = vld [vmem:[%s7776_s30 + $0x3c] sm:$0xf] }
  0xc7   : > { %6608 = vmatpush3.bf16.msra.mxu1 %v7500_v48  ;;  %6896 = vmatpush3.bf16.msra.mxu0 %v7502_v61  ;;  %v1807_v48 = vrot.slane %v1403_v38, 3  ;;  %v9386_v61 = vcombine.low %v8120_v3, %v8123_v12  ;;  %v7521_v3 = vld [vmem:[%s9346_s1 + $0x3e0] sm:$0xff]   ;;  %v9387_v12 = vcombine.low %v8148_v52, %v8153_v34  ;;  %v1806_v38 = vor.u32 %v1805_v57, %v1802_v42 }
  0xc8   : > { %6609 = vmatprep.subr.bf16.mxu1 %v7503_v53  ;;  %6897 = vmatprep.subr.bf16.mxu0 %v7504_v49  ;;  %v5954_v44 = vcombine.low %v7602_v47, %v8606_v24  ;;  %v9388_v52 = vshrl.u32 %v8458_v1, 16  ;;  %v1816_v24 = vrot.slane %v1424_v51, 4  ;;  %v7525_v1 = vld [vmem:[%s9346_s1 + $0x1b0] sm:$0xff]   ;;  %v8790_v51 = vld [vmem:[%s7776_s30 + $0x28] sm:$0xff]   ;;  %v8823_v42 = vld [vmem:[%s7776_s30 + $0x40] sm:$0xff]  }
  0xc9   : > { %6611 = vmatprep.mubr.msk.bf16.mxu1 %vm370_vm0, %v1623_v8  ;;  %6899 = vmatprep.mubr.msk.bf16.mxu0 %vm370_vm0, %v9383_v45  ;;  %v1809_v60 = vor.u32 %v1808_v17, %v1807_v48  ;;  %v7524_v8 = vld [vmem:[%s7776_s30 + $0x18] sm:$0xff]   ;;  %v5011_v37 = vrot.slane %v8790_v51, 2  ;;  %v7530_v48 = vld [vmem:[%s7776_s30 + $0x28] sm:$0xff]  }
  0xca   : > { %v1811_v34 = vrot.slane %v9388_v52, 3 }
  0xcb   : > { %6610 = vmatpush3.bf16.msra.mxu1 %v7503_v53  ;;  %6898 = vmatpush3.bf16.msra.mxu0 %v7504_v49  ;;  %v7523_v53 = vld [vmem:[%s9346_s1 + $0x3e8] sm:$0xff]   ;;  %v1812_v49 = vrot.slane %v1415_v19, 4  ;;  %v8780_v19 = vld [vmem:[%s7776_s30 + $0x20] sm:$0xff]  }
  0xcc   : > { %6623 = vmatprep.subr.bf16.mxu1 %v7507_v5  ;;  %6911 = vmatprep.subr.bf16.mxu0 %v7509_v55  ;;  %v5009_v45 = vrot.slane %v8780_v19, 2 }
  0xce   : > { %6612 = vmatmul.mubr.msk.bf16.vlgmr.msra.gmra.mrb[0].mxu1 %vm370_vm0, %v1625_v9  ;;  %6900 = vmatmul.mubr.msk.bf16.vlgmr.msra.gmra.mrb[0].mxu0 %vm370_vm0, %v9384_v33  ;;  %v1817_v9 = vor.u32 %v1816_v24, %v1815_v27  ;;  %v8826_v57 = vsel %vm996_vm4, %v5009_v45, %v5011_v37  ;;  %v7532_v24 = vld [vmem:[%s7776_s30 + $0x30] sm:$0xff]  }
  0xcf   : > { %6624 = vmatpush3.bf16.msra.mxu1 %v7507_v5  ;;  %6912 = vmatpush3.bf16.msra.mxu0 %v7509_v55  ;;  %v1810_v5 = vsel %vm1798_vm7, %v1806_v38, %v1809_v60  ;;  %v1813_v55 = vor.u32 %v1812_v49, %v1811_v34  ;;  %v5017_v38 = vrot.slane %v8823_v42, 2  ;;  %v7533_v34 = vld [vmem:[%s9346_s1 + $0x400] sm:$0xff]  }
  0xd0   : > { %6625 = vmatprep.subr.bf16.mxu1 %v7510_v56  ;;  %6913 = vmatprep.subr.bf16.mxu0 %v7511_v10 }
  0xd1   : > { %6615 = vmatprep.mubr.msk.bf16.mxu1 %vm370_vm0, %v1627_v31  ;;  %6903 = vmatprep.mubr.msk.bf16.mxu0 %vm370_vm0, %v9385_v58  ;;  %v9390_v31 = vshll.u32 %v8497_v50, 16  ;;  %v7529_v58 = vld [vmem:[%s9346_s1 + $0x3f8] sm:$0xff]  }
  0xd3   : > { %6626 = vmatpush3.bf16.msra.mxu1 %v7510_v56  ;;  %6914 = vmatpush3.bf16.msra.mxu0 %v7511_v10  ;;  %v9389_v56 = vshrl.u32 %v8497_v50, 16  ;;  %v1820_v33 = vrot.slane %v9390_v31, 4  ;;  %v1814_v50 = vsel %vm1798_vm7, %v1809_v60, %v1813_v55 }
  0xd4   : > { %6627 = vmatprep.subr.bf16.mxu1 %v7513_v62  ;;  %6915 = vmatprep.subr.bf16.mxu0 %v7515_v2 }
  0xd5   : > { %v1819_v10 = vrot.slane %v9389_v56, 3 }
  0xd6   : > { %6616 = vmatmul.mubr.msk.bf16.gmra.mrb[4].mxu1 %vm370_vm0, %v1629_v4  ;;  %6904 = vmatmul.mubr.msk.bf16.gmra.mrb[4].mxu0 %vm370_vm0, %v9386_v61  ;;  %v9391_v4 = vshrl.u32 %v8502_v13, 16  ;;  %v5013_v61 = vrot.slane %v8815_v30, 2  ;;  %v7531_v13 = vld [vmem:[%s9346_s1 + $0x1c0] sm:$0xff]  }
  0xd7   : > { %6628 = vmatpush3.bf16.msra.mxu1 %v7513_v62  ;;  %6916 = vmatpush3.bf16.msra.mxu0 %v7515_v2  ;;  %v5652_v62 = vcombine.low %v8787_v41, %v8787_v41  ;;  %v4355_v2 = vld [vmem:[%s7776_s30 + $0x18] sm:$0xf]  ;;  %v1821_v17 = vor.u32 %v1820_v33, %v1819_v10 }
  0xd8   : > { %6629 = vmatprep.subr.bf16.mxu1 %v7516_v28  ;;  %6917 = vmatprep.subr.bf16.mxu0 %v7517_v21  ;;  %v7536_v10 = vld [vmem:[%s7776_s30 + $0x38] sm:$0xff]  }
  0xd9   : > { %6619 = vmatprep.mubr.msk.bf16.mxu1 %vm370_vm0, %v1631_v11  ;;  %6907 = vmatprep.mubr.msk.bf16.mxu0 %vm370_vm0, %v9387_v12  ;;  %v1818_v11 = vsel %vm1798_vm7, %v1813_v55, %v1817_v9  ;;  %v4991_v12 = vld [vmem:[%s7776_s30 + $0x18] sm:$0xc]  ;;  %v1831_v60 = vshll.u32 %v5652_v62, 16 }
  0xda   : > { %v6090_v47 = vcombine.low %v4991_v12, %v8807_v36  ;;  %v7547_v12 = vld [vmem:[%s9346_s1 + $0x1e0] sm:$0xff]  }
  0xdb   : > { %6630 = vmatpush3.bf16.msra.mxu1 %v7516_v28  ;;  %6918 = vmatpush3.bf16.msra.mxu0 %v7517_v21  ;;  %v1823_v28 = vrot.slane %v9391_v4, 3  ;;  %v8820_v21 = vld [vmem:[%s7776_s30 + $0x38] sm:$0xff]  }
  0xdc   : > { %6631 = vmatprep.subr.bf16.mxu1 %v7519_v22  ;;  %6919 = vmatprep.subr.bf16.mxu0 %v7521_v3  ;;  %v5008_v49 = vrot.slane %v6090_v47, 2 }
  0xde   : > { %6620 = vmatmul.mubr.msk.bf16.gmra.mrb[8].mxu1 %vm370_vm0, %v1633_v7  ;;  %6908 = vmatmul.mubr.msk.bf16.gmra.mrb[8].mxu0 %vm370_vm0, %v5954_v44  ;;  %v6009_v7 = vcombine.low %v4355_v2, %v8807_v36  ;;  %v8841_v44 = vsel %vm996_vm4, %v5011_v37, %v5013_v61  ;;  %v7540_v2 = vld [vmem:[%s9346_s1 + $0x410] sm:$0xff]  }
  0xdf   : > { %6632 = vmatpush3.bf16.msra.mxu1 %v7519_v22  ;;  %6920 = vmatpush3.bf16.msra.mxu0 %v7521_v3  ;;  %v1824_v22 = vrot.slane %v9392_v16, 4  ;;  %v1828_v3 = vshrl.u32 %v5652_v62, 16  ;;  %v7538_v62 = vld [vmem:[%s9346_s1 + $0x1d0] sm:$0xff]   ;;  %v4434_v16 = vshrl.u32 %v8790_v51, 16 }
  0xe0   : > { %6633 = vmatprep.subr.bf16.mxu1 %v7522_v43  ;;  %6921 = vmatprep.subr.bf16.mxu0 %v7523_v53  ;;  %v4417_v55 = vshll.u32 %v6009_v7, 16  ;;  %v4415_v31 = vshrl.u32 %v6009_v7, 16  ;;  %v7549_v7 = vld [vmem:[%s9346_s1 + $0x420] sm:$0xff]  }
  0xe1   : > { %6635 = vmatprep.mubr.msk.bf16.mxu1 %vm370_vm0, %v1810_v5  ;;  %6923 = vmatprep.mubr.msk.bf16.mxu0 %vm370_vm0, %v7524_v8  ;;  %v1822_v8 = vsel %vm1798_vm7, %v1817_v9, %v1821_v17  ;;  %v1825_v27 = vor.u32 %v1824_v22, %v1823_v28  ;;  %v1830_v5 = vrot.slane %v1828_v3, 3  ;;  %v7535_v9 = vld [vmem:[%s9346_s1 + $0x408] sm:$0xff]   ;;  %v7541_v28 = vld [vmem:[%s9346_s1 + $0x1d8] sm:$0xff]   ;;  %v4438_v22 = vshll.u32 %v8815_v30, 16 }
  0xe2   : > { %v4419_v33 = vrot.slane %v4417_v55, 1  ;;  %v7555_v55 = vld [vmem:[%s9346_s1 + $0x1f0] sm:$0xff]  }
  0xe3   : > { %6634 = vmatpush3.bf16.msra.mxu1 %v7522_v43  ;;  %6922 = vmatpush3.bf16.msra.mxu0 %v7523_v53  ;;  %v5015_v43 = vrot.slane %v8820_v21, 2  ;;  %v1826_v56 = vsel %vm1798_vm7, %v1821_v17, %v1825_v27  ;;  %v7542_v17 = vld [vmem:[%s9346_s1 + $0x418] sm:$0xff]  }
  0xe4   : > { %6647 = vmatprep.subr.bf16.mxu1 %v7525_v1  ;;  %6935 = vmatprep.subr.bf16.mxu0 %v7527_v59 }
  0xe5   : > { %v8847_v53 = vsel %vm996_vm4, %v5013_v61, %v5015_v43  ;;  %v8852_v52 = vsel %vm996_vm4, %v5015_v43, %v5017_v38 }
  0xe6   : > { %6636 = vmatmul.mubr.msk.bf16.vlgmr.msra.gmra.mrb[0].mxu1 %vm370_vm0, %v1814_v50  ;;  %6924 = vmatmul.mubr.msk.bf16.vlgmr.msra.gmra.mrb[0].mxu0 %vm370_vm0, %v7526_v23  ;;  %v7534_v23 = vld [vmem:[%s9346_s1 + $0x1c8] sm:$0xff]   ;;  %v7539_v50 = vld [vmem:[%s7776_s30 + $0x40] sm:$0xff]  }
  0xe7   : > { %6648 = vmatpush3.bf16.msra.mxu1 %v7525_v1  ;;  %6936 = vmatpush3.bf16.msra.mxu0 %v7527_v59  ;;  %v1833_v1 = vrot.slane %v1831_v60, 4  ;;  %v8862_v59 = vsel %vm996_vm4, %v5008_v49, %v5009_v45  ;;  %v9393_v60 = vcombine.low %v8312_v26, %v8315_v18  ;;  %v7550_v18 = vld [vmem:[%s9346_s1 + $0x1e8] sm:$0xff]   ;;  %v4442_v26 = vshrl.u32 %v8815_v30, 16 }
  0xe8   : > { %6649 = vmatprep.subr.bf16.mxu1 %v7528_v35  ;;  %6937 = vmatprep.subr.bf16.mxu0 %v7529_v58  ;;  %v4446_v49 = vshll.u32 %v8820_v21, 16 }
  0xe9   : > { %6639 = vmatprep.mubr.msk.bf16.mxu1 %vm370_vm0, %v1818_v11  ;;  %6927 = vmatprep.mubr.msk.bf16.mxu0 %vm370_vm0, %v7530_v48  ;;  %v1834_v45 = vor.u32 %v1833_v1, %v1830_v5  ;;  %v4426_v11 = vshrl.u32 %v8780_v19, 16  ;;  %v4430_v48 = vshll.u32 %v8790_v51, 16  ;;  %v4450_v5 = vshrl.u32 %v8820_v21, 16 }
  0xea   : > { %v4454_v1 = vshll.u32 %v8823_v42, 16 }
  0xeb   : > { %6650 = vmatpush3.bf16.msra.mxu1 %v7528_v35  ;;  %6938 = vmatpush3.bf16.msra.mxu0 %v7529_v58  ;;  %v4422_v35 = vshll.u32 %v8780_v19, 16  ;;  %v1835_v37 = vsel %vm1798_vm7, %v1825_v27, %v1834_v45  ;;  %v4420_v58 = vor.u32 %v4419_v33, %v4415_v31  ;;  %v4432_v43 = vrot.slane %v4430_v48, 1 }
  0xec   : > { %6651 = vmatprep.subr.bf16.mxu1 %v7531_v13  ;;  %6939 = vmatprep.subr.bf16.mxu0 %v7533_v34  ;;  %v9394_v27 = vcombine.low %v8319_v0, %v8322_v63  ;;  %v4448_v0 = vrot.slane %v4446_v49, 1  ;;  %v4456_v45 = vrot.slane %v4454_v1, 1 }
  0xed   : > { %v4424_v4 = vrot.slane %v4422_v35, 1  ;;  %v4436_v47 = vor.u32 %v4434_v16, %v4432_v43 }
  0xee   : > { %6640 = vmatmul.mubr.msk.bf16.gmra.mrb[4].mxu1 %vm370_vm0, %v1822_v8  ;;  %6928 = vmatmul.mubr.msk.bf16.gmra.mrb[4].mxu0 %vm370_vm0, %v7532_v24  ;;  %v7551_v8 = vld [vmem:[%s9346_s1 + $0x428] sm:$0xff]  }
  0xef   : > { %6652 = vmatpush3.bf16.msra.mxu1 %v7531_v13  ;;  %6940 = vmatpush3.bf16.msra.mxu0 %v7533_v34  ;;  %v4425_v61 = vsel %vm281_vm2, %v4420_v58, %v4424_v4  ;;  %v4428_v3 = vor.u32 %v4426_v11, %v4424_v4  ;;  %v4440_v13 = vrot.slane %v4438_v22, 1  ;;  %v7563_v4 = vld [vmem:[%s9346_s1 + $0x200] sm:$0xff]  }
  0xf0   : > { %6653 = vmatprep.subr.bf16.mxu1 %v7534_v23  ;;  %6941 = vmatprep.subr.bf16.mxu0 %v7535_v9 }
  0xf1   : > { %6643 = vmatprep.mubr.msk.bf16.mxu1 %vm370_vm0, %v1826_v56  ;;  %6931 = vmatprep.mubr.msk.bf16.mxu0 %vm370_vm0, %v7536_v10  ;;  %v4433_v34 = vsel %vm281_vm2, %v4428_v3, %v4432_v43  ;;  %v4441_v24 = vsel %vm281_vm2, %v4436_v47, %v4440_v13  ;;  %v4444_v63 = vor.u32 %v4442_v26, %v4440_v13  ;;  %v7557_v56 = vld [vmem:[%s9346_s1 + $0x430] sm:$0xff]   ;;  %v7567_v43 = vld [vmem:[%s9346_s1 + $0x448] sm:$0xff]   ;;  %v4633_v47 = vrot.slane %v8790_v51, 1 }
  0xf2   : > { %v4452_v10 = vor.u32 %v4450_v5, %v4448_v0  ;;  %v7572_v13 = vld [vmem:[%s9346_s1 + $0x450] sm:$0xff]  }
  0xf3   : > { %6654 = vmatpush3.bf16.msra.mxu1 %v7534_v23  ;;  %6942 = vmatpush3.bf16.msra.mxu0 %v7535_v9  ;;  %v8944_v23 = vld [vmem:[%s7776_s30 + $0x48] ss:$0 sps:$4 sm:$0x11]   ;;  %v9395_v9 = vcombine.low %v8356_v29, %v8360_v25  ;;  %v4449_v31 = vsel %vm281_vm2, %v4444_v63, %v4448_v0  ;;  %v7558_v29 = vld [vmem:[%s9346_s1 + $0x1f8] sm:$0xff]   ;;  %v4458_v25 = vshrl.u32 %v8823_v42, 16 }
  0xf4   : > { %6655 = vmatprep.subr.bf16.mxu1 %v7538_v62  ;;  %6943 = vmatprep.subr.bf16.mxu0 %v7540_v2  ;;  %v4462_v33 = vshll.u32 %v8944_v23, 16  ;;  %v7575_v63 = vld [vmem:[%s7776_s30 + $0x1c] sm:$0xff]   ;;  %v7604_v0 = vld [vmem:[%s7776_s30 + $0x10] sm:$0xf] }
  0xf6   : > { %6644 = vmatmul.mubr.msk.bf16.gmra.mrb[8].mxu1 %vm370_vm0, %v1835_v37  ;;  %6932 = vmatmul.mubr.msk.bf16.gmra.mrb[8].mxu0 %vm370_vm0, %v7539_v50  ;;  %v9396_v37 = vcombine.low %v8363_v15, %v8369_v20  ;;  %v4457_v50 = vsel %vm281_vm2, %v4452_v10, %v4456_v45  ;;  %v4464_v15 = vrot.slane %v4462_v33, 1  ;;  %v9397_v20 = vcombine.low %v8416_v39, %v8419_v40  ;;  %v7566_v39 = vld [vmem:[%s9346_s1 + $0x208] sm:$0xff]   ;;  %v7577_v10 = vld [vmem:[%s9346_s1 + $0x220] sm:$0xff]  }
  0xf7   : > { %6656 = vmatpush3.bf16.msra.mxu1 %v7538_v62  ;;  %6944 = vmatpush3.bf16.msra.mxu0 %v7540_v2  ;;  %v4613_v62 = vld [vmem:[%s7776_s30 + $0x18] sm:$0xe]  ;;  %v4639_v33 = vrot.slane %v8823_v42, 1 }
  0xf8   : > { %6657 = vmatprep.subr.bf16.mxu1 %v7541_v28  ;;  %6945 = vmatprep.subr.bf16.mxu0 %v7542_v17  ;;  %v7559_v2 = vld [vmem:[%s9346_s1 + $0x438] sm:$0xff]   ;;  %v8975_v58 = vcombine.low %v4613_v62, %v8807_v36  ;;  %v7565_v36 = vld [vmem:[%s9346_s1 + $0x440] sm:$0xff]  }
  0xf9   : > { %6659 = vmatprep.mubr.msk.bf16.mxu1 %vm370_vm0, %v9393_v60  ;;  %6947 = vmatprep.mubr.msk.bf16.mxu0 %vm370_vm0, %v4425_v61 }
  0xfa   : > { %v4630_v3 = vrot.slane %v8975_v58, 1 }
  0xfb   : > { %6658 = vmatpush3.bf16.msra.mxu1 %v7541_v28  ;;  %6946 = vmatpush3.bf16.msra.mxu0 %v7542_v17  ;;  %v4460_v28 = vor.u32 %v4458_v25, %v4456_v45  ;;  %v7603_v17 = vld [vmem:[%s7776_s30 + $0x30] sm:$0xf]  ;;  %v4637_v45 = vrot.slane %v8820_v21, 1  ;;  %v4831_v21 = vrot.slane %v4458_v25, 1  ;;  %v9405_v25 = vshrl.u32 %v7863_v54, 16 }
  0xfc   : > { %6671 = vmatprep.subr.bf16.mxu1 %v7547_v12  ;;  %6959 = vmatprep.subr.bf16.mxu0 %v7549_v7  ;;  %v5682_v61 = vcombine.low %v7603_v17, %v8787_v41  ;;  %v7568_v41 = vld [vmem:[%s7776_s30 + $0xc] sm:$0xff]  }
  0xfd   : > { %v4465_v40 = vsel %vm281_vm2, %v4460_v28, %v4464_v15  ;;  %v7580_v28 = vld [vmem:[%s9346_s1 + $0x468] sm:$0xff]  }
  0xfe   : > { %6660 = vmatmul.mubr.msk.bf16.vlgmr.msra.gmra.mrb[0].mxu1 %vm370_vm0, %v9394_v27  ;;  %6948 = vmatmul.mubr.msk.bf16.vlgmr.msra.gmra.mrb[0].mxu0 %vm370_vm0, %v4433_v34  ;;  %v7570_v34 = vld [vmem:[%s7776_s30 + $0x14] sm:$0xff]   ;;  %v7581_v15 = vld [vmem:[%s7776_s30 + $0x2c] sm:$0xff]  }
  0xff   : > { %6672 = vmatpush3.bf16.msra.mxu1 %v7547_v12  ;;  %6960 = vmatpush3.bf16.msra.mxu0 %v7549_v7  ;;  %v4631_v12 = vrot.slane %v8780_v19, 1  ;;  %v7571_v7 = vld [vmem:[%s9346_s1 + $0x210] sm:$0xff]  }
 0x100   : > { %6673 = vmatprep.subr.bf16.mxu1 %v7550_v18  ;;  %6961 = vmatprep.subr.bf16.mxu0 %v7551_v8 }
 0x101   : > { %6663 = vmatprep.mubr.msk.bf16.mxu1 %vm370_vm0, %v9395_v9  ;;  %6951 = vmatprep.mubr.msk.bf16.mxu0 %vm370_vm0, %v4441_v24  ;;  %v4632_v60 = vsel %vm616_vm1, %v4630_v3, %v4631_v12  ;;  %v4634_v27 = vsel %vm616_vm1, %v4631_v12, %v4633_v47  ;;  %v7573_v24 = vld [vmem:[%s9346_s1 + $0x218] sm:$0xff]   ;;  %v4815_v3 = vrot.slane %v4426_v11, 1  ;;  %v4816_v12 = vrot.slane %v4422_v35, 2 }
 0x102   : > { %v7582_v11 = vld [vmem:[%s7776_s30 + $0x34] sm:$0xff]   ;;  %v9398_v35 = vshll.u32 %v7795_v14, 16 }
 0x103   : > { %6674 = vmatpush3.bf16.msra.mxu1 %v7550_v18  ;;  %6962 = vmatpush3.bf16.msra.mxu0 %v7551_v8  ;;  %v4635_v18 = vrot.slane %v8815_v30, 1  ;;  %v2351_v8 = vld [vmem:[%s7776_s30 + $0xc] sm:$0xf] }
 0x104   : > { %6675 = vmatprep.subr.bf16.mxu1 %v7555_v55  ;;  %6963 = vmatprep.subr.bf16.mxu0 %v7557_v56  ;;  %v5737_v9 = vcombine.low %v2351_v8, %v7604_v0  ;;  %v9399_v8 = vshll.u32 %v7825_v32, 16 }
 0x106   : > { %6664 = vmatmul.mubr.msk.bf16.gmra.mrb[4].mxu1 %vm370_vm0, %v9396_v37  ;;  %6952 = vmatmul.mubr.msk.bf16.gmra.mrb[4].mxu0 %vm370_vm0, %v4449_v31  ;;  %v7578_v31 = vld [vmem:[%s9346_s1 + $0x460] sm:$0xff]   ;;  %v2413_v62 = vshll.u32 %v5737_v9, 16  ;;  %v4811_v37 = vshll.u32 %v8975_v58, 16 }
 0x107   : > { %6676 = vmatpush3.bf16.msra.mxu1 %v7555_v55  ;;  %6964 = vmatpush3.bf16.msra.mxu0 %v7557_v56  ;;  %v7574_v55 = vld [vmem:[%s9346_s1 + $0x458] sm:$0xff]   ;;  %v4636_v56 = vsel %vm616_vm1, %v4633_v47, %v4635_v18 }
 0x108   : > { %6677 = vmatprep.subr.bf16.mxu1 %v7558_v29  ;;  %6965 = vmatprep.subr.bf16.mxu0 %v7559_v2 }
 0x109   : > { %6667 = vmatprep.mubr.msk.bf16.mxu1 %vm370_vm0, %v9397_v20  ;;  %6955 = vmatprep.mubr.msk.bf16.mxu0 %vm370_vm0, %v4457_v50  ;;  %v4638_v50 = vsel %vm616_vm1, %v4635_v18, %v4637_v45  ;;  %v4640_v20 = vsel %vm616_vm1, %v4637_v45, %v4639_v33  ;;  %v7586_v18 = vld [vmem:[%s9346_s1 + $0x478] sm:$0xff]  }
 0x10b   : > { %6678 = vmatpush3.bf16.msra.mxu1 %v7558_v29  ;;  %6966 = vmatpush3.bf16.msra.mxu0 %v7559_v2  ;;  %v7576_v29 = vld [vmem:[%s7776_s30 + $0x24] sm:$0xff]   ;;  %v4808_v2 = vshrl.u32 %v8975_v58, 16  ;;  %v2415_v58 = vrot.slane %v2413_v62, 1 }
 0x10c   : > { %6679 = vmatprep.subr.bf16.mxu1 %v7563_v4  ;;  %6967 = vmatprep.subr.bf16.mxu0 %v7565_v36 }
 0x10d   : > { %v4810_v17 = vrot.slane %v4808_v2, 1  ;;  %v9403_v2 = vshrl.u32 %v7848_v46, 16 }
 0x10e   : > { %6668 = vmatmul.mubr.msk.bf16.gmra.mrb[8].mxu1 %vm370_vm0, %v5682_v61  ;;  %6956 = vmatmul.mubr.msk.bf16.gmra.mrb[8].mxu0 %vm370_vm0, %v4465_v40  ;;  %v4813_v61 = vrot.slane %v4811_v37, 2  ;;  %v7583_v40 = vld [vmem:[%s9346_s1 + $0x230] sm:$0xff]  }
 0x10f   : > { %6680 = vmatpush3.bf16.msra.mxu1 %v7563_v4  ;;  %6968 = vmatpush3.bf16.msra.mxu0 %v7565_v36  ;;  %v7579_v4 = vld [vmem:[%s9346_s1 + $0x228] sm:$0xff]   ;;  %v2411_v36 = vshrl.u32 %v5737_v9, 16  ;;  %v7588_v9 = vld [vmem:[%s9346_s1 + $0x480] sm:$0xff]  }
 0x110   : > { %6681 = vmatprep.subr.bf16.mxu1 %v7566_v39  ;;  %6969 = vmatprep.subr.bf16.mxu0 %v7567_v43 }
 0x111   : > { %6683 = vmatprep.mubr.msk.bf16.mxu1 %vm370_vm0, %v7568_v41  ;;  %6971 = vmatprep.mubr.msk.bf16.mxu0 %vm370_vm0, %v4632_v60  ;;  %v2416_v19 = vor.u32 %v2415_v58, %v2411_v36  ;;  %v2420_v41 = vrot.slane %v9398_v35, 1  ;;  %v4814_v60 = vor.u32 %v4813_v61, %v4810_v17  ;;  %v9407_v35 = vshrl.u32 %v7897_v6, 16 }
 0x113   : > { %6682 = vmatpush3.bf16.msra.mxu1 %v7566_v39  ;;  %6970 = vmatpush3.bf16.msra.mxu0 %v7567_v43  ;;  %v4641_v39 = vrot.slane %v8944_v23, 1  ;;  %v7584_v43 = vld [vmem:[%s9346_s1 + $0x470] sm:$0xff]   ;;  %v4819_v23 = vrot.slane %v4434_v16, 1  ;;  %v2421_v16 = vsel %vm281_vm2, %v2416_v19, %v2420_v41 }
 0x114   : > { %6695 = vmatprep.subr.bf16.mxu1 %v7571_v7  ;;  %6983 = vmatprep.subr.bf16.mxu0 %v7572_v13 }
 0x115   : > { %v4642_v47 = vsel %vm616_vm1, %v4639_v33, %v4641_v39  ;;  %v9111_v33 = vld [vmem:[%s7776_s30 + $0x48] ss:$0 sps:$4 sm:$0x33]   ;;  %v7591_v39 = vld [vmem:[%s9346_s1 + $0x498] sm:$0xff]  }
 0x116   : > { %6684 = vmatmul.mubr.msk.bf16.vlgmr.msra.gmra.mrb[0].mxu1 %vm370_vm0, %v7570_v34  ;;  %6972 = vmatmul.mubr.msk.bf16.vlgmr.msra.gmra.mrb[0].mxu0 %vm370_vm0, %v4634_v27  ;;  %v4820_v34 = vrot.slane %v4430_v48, 2  ;;  %v2428_v27 = vrot.slane %v9399_v8, 1  ;;  %v4823_v48 = vrot.slane %v4442_v26, 1  ;;  %v9402_v26 = vshll.u32 %v7848_v46, 16  ;;  %v7590_v46 = vld [vmem:[%s9346_s1 + $0x490] sm:$0xff]  }
 0x117   : > { %6696 = vmatpush3.bf16.msra.mxu1 %v7571_v7  ;;  %6984 = vmatpush3.bf16.msra.mxu0 %v7572_v13  ;;  %v4817_v7 = vor.u32 %v4816_v12, %v4815_v3  ;;  %v7585_v13 = vld [vmem:[%s9346_s1 + $0x238] sm:$0xff]  }
 0x118   : > { %6697 = vmatprep.subr.bf16.mxu1 %v7573_v24  ;;  %6985 = vmatprep.subr.bf16.mxu0 %v7574_v55  ;;  %v4821_v0 = vor.u32 %v4820_v34, %v4819_v23  ;;  %v2436_v30 = vrot.slane %v9402_v26, 1  ;;  %v7605_v3 = vld [vmem:[%s7776_s30 + $0x3c] ss:$0 sps:$4 sm:$0x11]   ;;  %v7593_v23 = vld [vmem:[%s9346_s1 + $0x4a0] sm:$0xff]   ;;  %v5019_v34 = vrot.slane %v9111_v33, 2 }
 0x119   : > { %6687 = vmatprep.mubr.msk.bf16.mxu1 %vm370_vm0, %v7575_v63  ;;  %6975 = vmatprep.mubr.msk.bf16.mxu0 %vm370_vm0, %v4636_v56  ;;  %v4818_v51 = vsel %vm794_vm3, %v4814_v60, %v4817_v7  ;;  %v4824_v63 = vrot.slane %v4438_v22, 2  ;;  %v2458_v12 = vshll.u32 %v7605_v3, 16  ;;  %v5231_v3 = vld [vmem:[%s9347_s2 + $0x10] sm:$0xff]  ;;  %s6116_s30 = sshll.u32 %s7717_s19, 5 }
 0x11a   : > { %v4822_v45 = vsel %vm794_vm3, %v4817_v7, %v4821_v0  ;;  %v2440_v37 = vor.u32 %v9403_v2, %v2436_v30  ;;  %s9303_s29 = scalar_lea.hbm %s9349_s4, %s6116_s30 }
 0x11b   : > { %6698 = vmatpush3.bf16.msra.mxu1 %v7573_v24  ;;  %6986 = vmatpush3.bf16.msra.mxu0 %v7574_v55  ;;  %v9400_v24 = vshrl.u32 %v7795_v14, 16  ;;  %v9401_v14 = vshrl.u32 %v7825_v32, 16  ;;  %v4828_v32 = vrot.slane %v4446_v49, 2  ;;  %v4832_v49 = vrot.slane %v4454_v1, 2 }
 0x11c   : > { %6699 = vmatprep.subr.bf16.mxu1 %v7577_v10  ;;  %6987 = vmatprep.subr.bf16.mxu0 %v7578_v31  ;;  %v9406_v1 = vshll.u32 %v7897_v6, 16  ;;  %v2460_v60 = vrot.slane %v2458_v12, 1 }
 0x11d   : > { %v2424_v55 = vor.u32 %v9400_v24, %v2420_v41  ;;  %v2432_v56 = vor.u32 %v9401_v14, %v2428_v27  ;;  %v4833_v61 = vor.u32 %v4832_v49, %v4831_v21 }
 0x11e   : > { %6688 = vmatmul.mubr.msk.bf16.gmra.mrb[4].mxu1 %vm370_vm0, %v7576_v29  ;;  %6976 = vmatmul.mubr.msk.bf16.gmra.mrb[4].mxu0 %vm370_vm0, %v4638_v50  ;;  %v4827_v29 = vrot.slane %v4450_v5, 1  ;;  %v9404_v5 = vshll.u32 %v7863_v54, 16  ;;  %v2452_v58 = vrot.slane %v9406_v1, 1 }
 0x11f   : > { %6700 = vmatpush3.bf16.msra.mxu1 %v7577_v10  ;;  %6988 = vmatpush3.bf16.msra.mxu0 %v7578_v31  ;;  %v2429_v22 = vsel %vm281_vm2, %v2424_v55, %v2428_v27  ;;  %v4825_v10 = vor.u32 %v4824_v63, %v4823_v48  ;;  %v7589_v31 = vld [vmem:[%s9346_s1 + $0x488] sm:$0xff]   ;;  %v2437_v62 = vsel %vm281_vm2, %v2432_v56, %v2436_v30 }
 0x120   : > { %6701 = vmatprep.subr.bf16.mxu1 %v7579_v4  ;;  %6989 = vmatprep.subr.bf16.mxu0 %v7580_v28  ;;  %v2456_v41 = vor.u32 %v9407_v35, %v2452_v58  ;;  %v5233_v35 = vld [vmem:[%s9347_s2 + $0x20] sm:$0xff] }
 0x121   : > { %6691 = vmatprep.mubr.msk.bf16.mxu1 %vm370_vm0, %v7581_v15  ;;  %6979 = vmatprep.mubr.msk.bf16.mxu0 %vm370_vm0, %v4640_v20  ;;  %v4826_v50 = vsel %vm794_vm3, %v4821_v0, %v4825_v10  ;;  %v4836_v15 = vshrl.u32 %v9111_v33, 16  ;;  %v4839_v20 = vshll.u32 %v9111_v33, 16 }
 0x123   : > { %6702 = vmatpush3.bf16.msra.mxu1 %v7579_v4  ;;  %6990 = vmatpush3.bf16.msra.mxu0 %v7580_v28  ;;  %v2444_v4 = vrot.slane %v9404_v5, 1  ;;  %v4829_v28 = vor.u32 %v4828_v32, %v4827_v29  ;;  %v4841_v54 = vrot.slane %v4839_v20, 2 }
 0x124   : > { %6703 = vmatprep.subr.bf16.mxu1 %v7583_v40  ;;  %6991 = vmatprep.subr.bf16.mxu0 %v7584_v43 }
 0x125   : > { %v2448_v36 = vor.u32 %v9405_v25, %v2444_v4  ;;  %v2445_v17 = vsel %vm281_vm2, %v2440_v37, %v2444_v4  ;;  %v4834_v19 = vsel %vm794_vm3, %v4829_v28, %v4833_v61 }
 0x126   : > { %6692 = vmatmul.mubr.msk.bf16.gmra.mrb[8].mxu1 %vm370_vm0, %v7582_v11  ;;  %6980 = vmatmul.mubr.msk.bf16.gmra.mrb[8].mxu0 %vm370_vm0, %v4642_v47  ;;  %v2461_v47 = vsel %vm281_vm2, %v2456_v41, %v2460_v60 }
 0x127   : > { %6704 = vmatpush3.bf16.msra.mxu1 %v7583_v40  ;;  %6992 = vmatpush3.bf16.msra.mxu0 %v7584_v43  ;;  %v4830_v40 = vsel %vm794_vm3, %v4825_v10, %v4829_v28  ;;  %v4838_v43 = vrot.slane %v4836_v15, 1  ;;  %v2453_v11 = vsel %vm281_vm2, %v2448_v36, %v2452_v58  ;;  %v5229_v15 = vld [vmem:[%s9347_s2] sm:$0xff] }
 0x128   : > { %6705 = vmatprep.subr.bf16.mxu1 %v7585_v13  ;;  %6993 = vmatprep.subr.bf16.mxu0 %v7586_v18 }
 0x129   : > { %6707 = vmatprep.mubr.msk.bf16.mxu1 %vm370_vm0, %v2421_v16  ;;  %6995 = vmatprep.mubr.msk.bf16.mxu0 %vm370_vm0, %v4818_v51  ;;  %v4842_v7 = vor.u32 %v4841_v54, %v4838_v43  ;;  %v5230_v54 = vld [vmem:[%s9347_s2 + $0x8] sm:$0xff] }
 0x12b   : > { %6706 = vmatpush3.bf16.msra.mxu1 %v7585_v13  ;;  %6994 = vmatpush3.bf16.msra.mxu0 %v7586_v18  ;;  %v4843_v6 = vsel %vm794_vm3, %v4833_v61, %v4842_v7  ;;  %v7594_v13 = vld [vmem:[%s9346_s1 + $0x4a8] sm:$0xff]  }
 0x12c   : > { %7031 = vmatprep.subr.bf16.mxu1 %v7588_v9  ;;  %7007 = vmatprep.subr.bf16.mxu0 %v7588_v9 }
 0x12e   : > { %6708 = vmatmul.mubr.msk.bf16.vlgmr.msra.gmra.mrb[0].mxu1 %vm370_vm0, %v2429_v22  ;;  %6996 = vmatmul.mubr.msk.bf16.vlgmr.msra.gmra.mrb[0].mxu0 %vm370_vm0, %v4822_v45 }
 0x12f   : > { %7037 = vmatpush3.bf16.msra.mxu1 %v7588_v9  ;;  %7008 = vmatpush3.bf16.msra.mxu0 %v7588_v9 }
 0x130   : > { %7032 = vmatprep.subr.bf16.mxu1 %v7589_v31  ;;  %7009 = vmatprep.subr.bf16.mxu0 %v7589_v31 }
 0x131   : > { %6711 = vmatprep.mubr.msk.bf16.mxu1 %vm370_vm0, %v2437_v62  ;;  %6999 = vmatprep.mubr.msk.bf16.mxu0 %vm370_vm0, %v4826_v50 }
 0x133   : > { %7038 = vmatpush3.bf16.msra.mxu1 %v7589_v31  ;;  %7010 = vmatpush3.bf16.msra.mxu0 %v7589_v31 }
 0x134   : > { %7033 = vmatprep.subr.bf16.mxu1 %v7590_v46  ;;  %7011 = vmatprep.subr.bf16.mxu0 %v7590_v46 }
 0x136   : > { %6712 = vmatmul.mubr.msk.bf16.gmra.mrb[4].mxu1 %vm370_vm0, %v2445_v17  ;;  %7000 = vmatmul.mubr.msk.bf16.gmra.mrb[4].mxu0 %vm370_vm0, %v4830_v40 }
 0x137   : > { %7039 = vmatpush3.bf16.msra.mxu1 %v7590_v46  ;;  %7012 = vmatpush3.bf16.msra.mxu0 %v7590_v46 }
 0x138   : > { %7034 = vmatprep.subr.bf16.mxu1 %v7591_v39  ;;  %7013 = vmatprep.subr.bf16.mxu0 %v7591_v39 }
 0x139   : > { %6715 = vmatprep.mubr.msk.bf16.mxu1 %vm370_vm0, %v2453_v11  ;;  %7003 = vmatprep.mubr.msk.bf16.mxu0 %vm370_vm0, %v4834_v19 }
 0x13b   : > { %7040 = vmatpush3.bf16.msra.mxu1 %v7591_v39  ;;  %7014 = vmatpush3.bf16.msra.mxu0 %v7591_v39  ;;  %v5232_v39 = vld [vmem:[%s9347_s2 + $0x18] sm:$0xff] }
 0x13c   : > { %7035 = vmatprep.subr.bf16.mxu1 %v7593_v23  ;;  %7015 = vmatprep.subr.bf16.mxu0 %v7593_v23 }
 0x13e   : > { %6716 = vmatmul.mubr.msk.bf16.gmra.mrb[8].mxu1 %vm370_vm0, %v2461_v47  ;;  %7004 = vmatmul.mubr.msk.bf16.gmra.mrb[8].mxu0 %vm370_vm0, %v4843_v6 }
 0x13f   : > { %7041 = vmatpush3.bf16.msra.mxu1 %v7593_v23  ;;  %7016 = vmatpush3.bf16.msra.mxu0 %v7593_v23 }
 0x140   : > { %7036 = vmatprep.subr.bf16.mxu1 %v7594_v13  ;;  %7017 = vmatprep.subr.bf16.mxu0 %v7594_v13 }
 0x141   : > { %7019 = vmatprep.mubr.msk.bf16.mxu0 %vm370_vm0, %v8862_v59  ;;  %7023 = vmatprep.mubr.msk.bf16.mxu1 %vm370_vm0, %v8841_v44  ;;  %v5020_v59 = vsel %vm996_vm4, %v5017_v38, %v5019_v34 }
 0x143   : > { %7042 = vmatpush3.bf16.msra.mxu1 %v7594_v13  ;;  %7018 = vmatpush3.bf16.msra.mxu0 %v7594_v13 }
 0x146   : > { %7024 = vmatmul.mubr.msk.bf16.vlgmr.msra.gmra.mrb[12].mxu1 %vm370_vm0, %v8847_v53  ;;  %7020 = vmatmul.mubr.msk.bf16.vlgmr.msra.gmra.mrb[0].mxu0 %vm370_vm0, %v8826_v57 }
 0x147   : > { %7027 = vmatprep.mubr.msk.bf16.mxu1 %vm370_vm0, %v8852_v52 }
 0x14e   : > { %7028 = vmatmul.mubr.msk.bf16.gmra.mrb[16].mxu1 %vm370_vm0, %v5020_v59 }
 0x201   : > { %v6709_v44 = vpop.f32.mrb[0].mxu1 }
 0x202   : > { %v2550_v18 = vpop.f32.mrb[1].mxu1 }
 0x203   : > { %v6710_v16 = vpop.f32.mrb[2].mxu1 }
 0x204   : > { %v2553_v8 = vpop.f32.mrb[3].mxu1 }
 0x209   : > { %v6713_v27 = vpop.f32.mrb[4].mxu1  ;;  %v7001_v53 = vpop.f32.mrb[4].mxu0 }
 0x20a   : > { %v2566_v24 = vpop.f32.mrb[5].mxu1  ;;  %v7047_v55 = vadd.f32 %v7001_v53, %v6713_v27  ;;  %v4948_v57 = vpop.f32.mrb[5].mxu0  ;;  %v5234_v27 = vld [vmem:[%s9347_s2 + $0x28] sm:$0xff] }
 0x20b   : > { %v6714_v51 = vpop.f32.mrb[6].mxu1  ;;  %v7049_v48 = vadd.f32 %v4948_v57, %v2566_v24  ;;  %v7002_v52 = vpop.f32.mrb[6].mxu0 }
 0x20c   : > { %v2569_v63 = vpop.f32.mrb[7].mxu1  ;;  %v7051_v0 = vadd.f32 %v7002_v52, %v6714_v51  ;;  %v4951_v42 = vpop.f32.mrb[7].mxu0 }
 0x20d   : > { %v7053_v9 = vadd.f32 %v4951_v42, %v2569_v63 }
 0x211   : > { %v6717_v38 = vpop.f32.mrb[8].mxu1  ;;  %v7005_v14 = vpop.f32.mrb[8].mxu0 }
 0x212   : > { %v2582_v56 = vpop.f32.mrb[9].mxu1  ;;  %v7055_v26 = vadd.f32 %v7005_v14, %v6717_v38  ;;  %v4964_v30 = vpop.f32.mrb[9].mxu0 }
 0x213   : > { %v6718_v22 = vpop.f32.mrb[10].mxu1  ;;  %v9175_v10 = vadd.f32 %v4964_v30, %v2582_v56  ;;  %v7006_v45 = vpop.f32.mrb[10].mxu0  ;;  %v5236_v30 = vld [vmem:[%s9347_s2 + $0x38] sm:$0xff] }
 0x214   : > { %v2585_v31 = vpop.f32.mrb[11].mxu1  ;;  %v9177_v29 = vadd.f32 %v7006_v45, %v6718_v22  ;;  %v4967_v32 = vpop.f32.mrb[11].mxu0 }
 0x215   : > { %v9179_v33 = vadd.f32 %v4967_v32, %v2585_v31 }
 0x219   : > { %v7025_v62 = vpop.f32.mrb[12].mxu1  ;;  %v7021_v2 = vpop.f32.mrb[0].mxu0 }
 0x21a   : > { %v9182_v37 = vadd.f32 %v7047_v55, %v7025_v62  ;;  %v5125_v50 = vpop.f32.mrb[13].mxu1  ;;  %v7043_v5 = vadd.f32 %v7021_v2, %v6709_v44  ;;  %v5109_v4 = vpop.f32.mrb[1].mxu0  ;;  %v5235_v55 = vld [vmem:[%s9347_s2 + $0x30] sm:$0xff] }
 0x21b   : > { %v9189_v21 = vadd.f32 %v7049_v48, %v5125_v50  ;;  %v7026_v49 = vpop.f32.mrb[14].mxu1  ;;  %v7044_v46 = vadd.f32 %v5109_v4, %v2550_v18  ;;  %v7022_v20 = vpop.f32.mrb[2].mxu0 }
 0x21c   : > { %v6125_v28 = vpack.c.bf16 %v9182_v37, %v9182_v37  ;;  %v9196_v25 = vadd.f32 %v7051_v0, %v7026_v49  ;;  %v5128_v36 = vpop.f32.mrb[15].mxu1  ;;  %v6121_v1 = vpack.c.bf16 %v7043_v5, %v7043_v5  ;;  %v5112_v17 = vpop.f32.mrb[3].mxu0  ;;  %v7045_v40 = vadd.f32 %v7022_v20, %v6710_v16 }
 0x21d   : > { %v6123_v58 = vpack.c.bf16 %v9189_v21, %v9189_v21  ;;  %v6119_v61 = vpack.c.bf16 %v7044_v46, %v7044_v46  ;;  %v5241_v12 = vmul.f32 %v7044_v46, %v5229_v15  ;;  %v5243_v19 = vmul.f32 %v7043_v5, %v5231_v3 }
 0x21e   : > { %5223 = vst.msk [vmem:[%s9187_s6 + $0x18] sm:$0xf] %vm5216_vm8, %v6125_v28  ;;  %5219 = vst.msk [vmem:[%s9187_s6 + $0x8] sm:$0xf] %vm5216_vm8, %v6121_v1  ;;  %v6126_v43 = vpack.c.bf16 %v9196_v25, %v9196_v25  ;;  %v6122_v41 = vpack.c.bf16 %v7045_v40, %v7045_v40  ;;  %v7046_v60 = vadd.f32 %v5112_v17, %v2553_v8  ;;  %v5238_v1 = vld [vmem:[%s9347_s2 + $0x48] sm:$0xff] }
 0x21f   : > { %5221 = vst.msk [vmem:[%s9187_s6 + $0x10] sm:$0xf] %vm5216_vm8, %v6123_v58  ;;  %5217 = vst.msk [vmem:[%s9187_s6] sm:$0xf] %vm5216_vm8, %v6119_v61  ;;  %v5283_v23 = vmul.f32 %v7044_v46, %v5241_v12  ;;  %v7054_v47 = vadd.f32 %v7053_v9, %v5128_v36  ;;  %v5244_v34 = vmul.f32 %v7045_v40, %v5232_v39  ;;  %v5254_v57 = vsel %vm5253_vm9, %v5241_v12, 0.0 }
 0x220   : > { %5224 = vst.msk [vmem:[%s9187_s6 + $0x1c] sm:$0xf] %vm5216_vm8, %v6126_v43  ;;  %5220 = vst.msk [vmem:[%s9187_s6 + $0xc] sm:$0xf] %vm5216_vm8, %v6122_v41  ;;  %v6120_v59 = vpack.c.bf16 %v7046_v60, %v7046_v60  ;;  %v5242_v44 = vmul.f32 %v7046_v60, %v5230_v54  ;;  %v5245_v16 = vmul.f32 %v9189_v21, %v5233_v35  ;;  %v5257_v52 = vsel %vm5253_vm9, %v5243_v19, 0.0  ;;  %v5240_v35 = vld [vmem:[%s9347_s2 + $0x58] sm:$0xff] }
 0x221   : > { %v7029_v11 = vpop.f32.mrb[16].mxu1  ;;  %v6124_v8 = vpack.c.bf16 %v7054_v47, %v7054_v47  ;;  %v5285_v24 = vmul.f32 %v7043_v5, %v5243_v19  ;;  %v5295_v63 = vsel %vm5253_vm9, %v5283_v23, 0.0  ;;  %v5286_v9 = vmul.f32 %v7045_v40, %v5244_v34  ;;  %v5239_v40 = vld [vmem:[%s9347_s2 + $0x50] sm:$0xff] }
 0x222   : > { %v5141_v7 = vpop.f32.mrb[17].mxu1  ;;  %v9224_v6 = vadd.f32 %v7055_v26, %v7029_v11  ;;  %5218 = vst.msk [vmem:[%s9187_s6 + $0x4] sm:$0xf] %vm5216_vm8, %v6120_v59  ;;  %v5255_v51 = vsel %vm5253_vm9, %v5242_v44, 0.0  ;;  %v5284_v48 = vmul.f32 %v7046_v60, %v5242_v44  ;;  %v5246_v14 = vmul.f32 %v7054_v47, %v5234_v27 }
 0x223   : > { %v7030_v13 = vpop.f32.mrb[18].mxu1  ;;  %v5256_v0 = vadd.f32 %v5255_v51, %v5254_v57  ;;  %5222 = vst.msk [vmem:[%s9187_s6 + $0x14] sm:$0xf] %vm5216_vm8, %v6124_v8  ;;  %v7058_v42 = vadd.f32 %v9175_v10, %v5141_v7  ;;  %v5247_v26 = vmul.f32 %v9182_v37, %v5235_v55  ;;  %v5298_v32 = vsel %vm5253_vm9, %v5285_v24, 0.0 }
 0x224   : > { %v5144_v18 = vpop.f32.mrb[19].mxu1  ;;  %v6129_v53 = vpack.c.bf16 %v9224_v6, %v9224_v6  ;;  %v5296_v38 = vsel %vm5253_vm9, %v5284_v48, 0.0  ;;  %v7060_v56 = vadd.f32 %v9177_v29, %v7030_v13  ;;  %v5287_v10 = vmul.f32 %v9189_v21, %v5245_v16  ;;  %v5237_v29 = vld [vmem:[%s9347_s2 + $0x40] sm:$0xff] }
 0x225   : > { %v5258_v22 = vadd.f32 %v5257_v52, %v5256_v0  ;;  %v5297_v45 = vadd.f32 %v5296_v38, %v5295_v63  ;;  %v6127_v31 = vpack.c.bf16 %v7058_v42, %v7058_v42  ;;  %v5259_v62 = vsel %vm5253_vm9, %v5244_v34, 0.0 }
 0x226   : > { %5227 = vst.msk [vmem:[%s9187_s6 + $0x28] sm:$0xf] %vm5216_vm8, %v6129_v53  ;;  %v6130_v2 = vpack.c.bf16 %v7060_v56, %v7060_v56  ;;  %v7062_v4 = vadd.f32 %v9179_v33, %v5144_v18  ;;  %v5261_v49 = vsel %vm5253_vm9, %v5245_v16, 0.0  ;;  %v5300_v28 = vsel %vm5253_vm9, %v5286_v9, 0.0 }
 0x227   : > { %v5299_v50 = vadd.f32 %v5298_v32, %v5297_v45  ;;  %v5260_v5 = vadd.f32 %v5259_v62, %v5258_v22  ;;  %5225 = vst.msk [vmem:[%s9187_s6 + $0x20] sm:$0xf] %vm5216_vm8, %v6127_v31  ;;  %v5248_v21 = vmul.f32 %v9196_v25, %v5236_v30  ;;  %v5288_v46 = vmul.f32 %v7054_v47, %v5246_v14 }
 0x228   : > { %5228 = vst.msk [vmem:[%s9187_s6 + $0x2c] sm:$0xf] %vm5216_vm8, %v6130_v2  ;;  %v6128_v36 = vpack.c.bf16 %v7062_v4, %v7062_v4  ;;  %v5289_v58 = vmul.f32 %v9182_v37, %v5247_v26  ;;  %v5302_v33 = vsel %vm5253_vm9, %v5287_v10, 0.0  ;;  %v5263_v17 = vsel %vm5253_vm9, %v5246_v14, 0.0 }
 0x229   : > { %v5262_v15 = vadd.f32 %v5261_v49, %v5260_v5  ;;  %v5301_v20 = vadd.f32 %v5300_v28, %v5299_v50  ;;  %v5249_v61 = vmul.f32 %v7058_v42, %v5237_v29  ;;  %v5265_v39 = vsel %vm5253_vm9, %v5247_v26, 0.0 }
 0x22a   : > { %5226 = vst.msk [vmem:[%s9187_s6 + $0x24] sm:$0xf] %vm5216_vm8, %v6128_v36  ;;  %v5290_v43 = vmul.f32 %v9196_v25, %v5248_v21  ;;  %v5304_v54 = vsel %vm5253_vm9, %v5288_v46, 0.0  ;;  %v5250_v37 = vmul.f32 %v7062_v4, %v5238_v1  ;;  %v5306_v41 = vsel %vm5253_vm9, %v5289_v58, 0.0  ;;  %s196_s6 = sand.u32 1, %s7660_s16  }
 0x22b   : > { %v5264_v3 = vadd.f32 %v5263_v17, %v5262_v15  ;;  %v5303_v12 = vadd.f32 %v5302_v33, %v5301_v20  ;;  %v5267_v60 = vsel %vm5253_vm9, %v5248_v21, 0.0  ;;  %v5251_v7 = vmul.f32 %v9224_v6, %v5239_v40  ;;  %s5438_s20 = sshll.u32 %s196_s6, 1  ;;  %s5334_s5 = scalar_lea.sflag [#allocation3], %s196_s6 }
 0x22c   : > { %v5291_v23 = vmul.f32 %v7058_v42, %v5249_v61  ;;  %v5308_v25 = vsel %vm5253_vm9, %v5290_v43, 0.0  ;;  %v5269_v34 = vsel %vm5253_vm9, %v5249_v61, 0.0  ;;  %v5252_v59 = vmul.f32 %v7060_v56, %v5240_v35  ;;  %s198_s22 = scalar_lea.vmem [#allocation2], %s5438_s20 }
 0x22d   : > { %v5266_v11 = vadd.f32 %v5265_v39, %v5264_v3  ;;  %v5305_v19 = vadd.f32 %v5304_v54, %v5303_v12  ;;  %v5292_v44 = vmul.f32 %v7062_v4, %v5250_v37  ;;  %v5293_v8 = vmul.f32 %v9224_v6, %v5251_v7  ;;  %s5350_s23 = sshll.u32 %s198_s22, 4  ;;  %s9305_s23 = int_to_ptr.vmem [resolvable:$true] %s5350_s23 }
 0x22e   : > { %v5310_v27 = vsel %vm5253_vm9, %v5291_v23, 0.0  ;;  %v5271_v53 = vsel %vm5253_vm9, %v5250_v37, 0.0  ;;  %v5273_v57 = vsel %vm5253_vm9, %v5251_v7, 0.0  ;;  %v5294_v51 = vmul.f32 %v7060_v56, %v5252_v59  ;;  %s7606_s19 = scalar_lea.vmem %s9305_s23, 32  ;;  %p7613_p0 = scmp.lt.s32.totalorder %s9305_s23, %s7611_s8 }
 0x22f   : > { %v5307_v47 = vadd.f32 %v5306_v41, %v5305_v19  ;;  %v5268_v13 = vadd.f32 %v5267_v60, %v5266_v11  ;;  %v5312_v48 = vsel %vm5253_vm9, %v5292_v44, 0.0  ;;  %v5314_v0 = vsel %vm5253_vm9, %v5293_v8, 0.0  ;;  %p7607_p11 = scmp.ne.s32.totalorder %s9305_s23, %s7606_s19  ;;  %p7614_p1 = scmp.lt.s32.totalorder %s7612_s9, %s7606_s19 }
 0x230   : > { %v5275_v42 = vsel %vm5253_vm9, %v5252_v59, 0.0  ;;  %v5316_v38 = vsel %vm5253_vm9, %v5294_v51, 0.0 }
 0x231   : > { %v5270_v18 = vadd.f32 %v5269_v34, %v5268_v13  ;;  %v5309_v16 = vadd.f32 %v5308_v25, %v5307_v47  ;;  %p7608_p12 = pnand %p7607_p11, %p7734_p5  ;;  %p7615_p2 = por %p7614_p1, %p7613_p0 }
 0x233   : > { %v5311_v24 = vadd.f32 %v5310_v27, %v5309_v16  ;;  %v5272_v55 = vadd.f32 %v5271_v53, %v5270_v18  ;;  %p7609_p13 = pneg %p7608_p12 }
 0x235   : > { %v5274_v52 = vadd.f32 %v5273_v57, %v5272_v55  ;;  %v5313_v63 = vadd.f32 %v5312_v48, %v5311_v24  ;;  %p7616_p3 = pnand %p7615_p2, %p7609_p13 }
 0x237   : > { %v5276_v9 = vadd.f32 %v5275_v42, %v5274_v52  ;;  %v5315_v6 = vadd.f32 %v5314_v0, %v5313_v63 }
 0x239   : > { %v5277_v14 = vrot.slane %v5276_v9, 4  ;;  %v5317_v26 = vadd.f32 %v5316_v38, %v5315_v6 }
 0x23b   : > { %v5278_v30 = vadd.f32 %v5277_v14, %v5276_v9  ;;  %v5318_v22 = vrot.slane %v5317_v26, 4 }
 0x23d   : > { %v5319_v45 = vadd.f32 %v5318_v22, %v5317_v26  ;;  %v5279_v56 = vrot.slane %v5278_v30, 2 }
 0x23f   : > { %v5280_v31 = vadd.f32 %v5279_v56, %v5278_v30  ;;  %v5320_v32 = vrot.slane %v5319_v45, 2 }
 0x241   : > { %v5281_v10 = vrot.slane %v5280_v31, 1  ;;  %v5321_v62 = vadd.f32 %v5320_v32, %v5319_v45 }
 0x243   : > { %v5322_v2 = vrot.slane %v5321_v62, 1  ;;  %v5282_v50 = vadd.f32 %v5281_v10, %v5280_v31 }
 0x245   : > { %v5323_v5 = vadd.f32 %v5322_v2, %v5321_v62 }
 0x247   : > { %v5325_v29 = vsel %vm5324_vm10, %v5282_v50, %v5323_v5 }
 0x248   : > { %5327 = vst.msk [vmem:[%s198_s22] sm:$0x3] %vm5326_vm11, %v5325_v29 }
 0x249   : > { %7619 = shalt.err (!%p7616_p3)
}
 0x24a   : > { %s7620_s10 = scalar_lea.hbm %s9303_s29, 32  ;;  %s7624_s13 = scalar_lea.hbm %s9349_s4, 64 }
 0x24b   : > { %p7621_p4 = scmp.ne.s32.totalorder %s9303_s29, %s7620_s10  ;;  %p7625_p9 = scmp.lt.u32.totalorder %s9303_s29, %s9349_s4 }
 0x24c   : > { %p7626_p10 = scmp.lt.u32.totalorder %s7624_s13, %s7620_s10  ;;  %p7628_p12 = scmp.lt.u32.totalorder %s7620_s10, %s9303_s29 }
 0x24d   : > { %p7622_p7 = pnand %p7621_p4, %p7734_p5 }
 0x24e   : > { %p7627_p11 = por %p7626_p10, %p7625_p9 }
 0x24f   : > { %p7623_p8 = pneg %p7622_p7 }
 0x250   : > { %p7629_p13 = por %p7628_p12, %p7627_p11 }
 0x252   : > { %p7630_p0 = pnand %p7629_p13, %p7623_p8 }
 0x254   : > { %7633 = shalt.err (!%p7630_p0)
}
 0x255   : > { %7333 = dma.vmem_to_hbm [thread:$0]  (%p7734_p5), %s9305_s23, 32, %s9303_s29, %s5334_s5  }
 0x256 PF: > { %p7339_p1 = scmp.ge.s32.totalorder %s7668_s18, 2  ;;  %s5370_s20 = sand.u32 1, %s7656_s15  }
 0x257   : > { %s5371_s30 = scalar_lea.sflag [#allocation3], %s5370_s20 }
 0x258   : > { %p7336_p2 = pnand %p7339_p1, %p7738_p6 }
 0x25a   : > { %7651 = dma.done.wait (!%p7336_p2), %s5371_s30, 32  }
 0x25b   : > { %7653 = vsyncadd (!%p7336_p2), %s5371_s30, 4294967264  ;;  %p15_p3 = scmp.ge.s32.totalorder %s7721_s21, 4   ;;  %s9408_s15 = smov %s7660_s16 }
 0x25c   : > { %s9409_s16 = smov %s7664_s17  ;;  %s9410_s17 = smov %s7732_s24 }
 0x25d   : > { %s9411_s18 = smov %s7721_s21  ;;  %17 = sbr.rel (!%p15_p3) target bundleno = 3 (0x3), region = 103 }
 0x264   :  { %5376 = vsyncpa [#allocation3], 1 }
 0x265   :  { %5378 = vsyncpa [#allocation3 + $0x1], 1 }

</bundles_post_ra>
